<compile_context>
chip_gen: v6e
topology: v6e:2x2x1
jax: 0.10.0
libtpu: 0.0.40
codegen_flags: <defaults>
</compile_context>

<pallas_src>
import functools
import inspect

import jax
import jax.numpy as jnp
from jax.experimental import pallas as pl
from jax.experimental.pallas import tpu as pltpu


# ---------------------------------------------------------------------------
# Generation-aware tuning (v5e/v6e: 128 MiB VMEM, v7x: 64 MiB)
# ---------------------------------------------------------------------------
def _vmem_capacity_bytes():
    try:
        return int(pltpu.get_tpu_info().vmem_capacity_bytes)
    except Exception:
        return 64 * 1024 * 1024  # conservative default (v7x-sized)


_VMEM_CAP = _vmem_capacity_bytes()
_BIG_VMEM = _VMEM_CAP >= 100 * 1024 * 1024            # v5e / v6e
_VMEM_LIMIT = min(_VMEM_CAP * 3 // 4, 96 * 1024 * 1024)
_ROW_TILE_NARROW = 2048 if _BIG_VMEM else 1024        # H-wide row-slab kernels
_ROW_TILE_WIDE = 512 if _BIG_VMEM else 256            # fused FFN (I-wide scratch)


def _supports_single_buffering():
    """Probe whether pipeline_mode=pl.Buffered(1) compiles on this runtime."""
    try:
        if not hasattr(pl, "Buffered"):
            return False
        if "pipeline_mode" not in inspect.signature(pl.BlockSpec).parameters:
            return False

        def _k(x_ref, o_ref):
            o_ref[...] = x_ref[...] + 1.0

        f = pl.pallas_call(
            _k,
            grid=(2,),
            in_specs=[pl.BlockSpec((8, 128), lambda i: (0, 0),
                                   pipeline_mode=pl.Buffered(1))],
            out_specs=pl.BlockSpec((8, 128), lambda i: (i, 0)),
            out_shape=jax.ShapeDtypeStruct((16, 128), jnp.float32),
        )
        jax.block_until_ready(f(jnp.zeros((8, 128), jnp.float32)))
        return True
    except Exception:
        return False


_SINGLE_BUF = _supports_single_buffering()


def _const_spec(shape):
    """BlockSpec for a grid-invariant operand (weights / biases / LN params).

    Single-buffered when supported: the index_map is constant, so a second
    pipeline buffer would only burn VMEM (matters most on v7x's 64 MiB).
    """
    idx = lambda i: (0,) * len(shape)
    if _SINGLE_BUF:
        return pl.BlockSpec(shape, idx, pipeline_mode=pl.Buffered(1))
    return pl.BlockSpec(shape, idx)


def _row_tile(m, max_tile):
    """Largest power-of-two row tile <= max_tile that divides m."""
    for t in (2048, 1024, 512, 256, 128, 64, 32, 16, 8):
        if t <= max_tile and m % t == 0:
            return t
    return m


def _cparams(semantics):
    return pltpu.CompilerParams(
        dimension_semantics=semantics, vmem_limit_bytes=_VMEM_LIMIT
    )


# ---------------------------------------------------------------------------
# Kernels
# ---------------------------------------------------------------------------
def _layernorm_kernel(x_ref, g_ref, b_ref, o_ref):
    h = x_ref[...].astype(jnp.float32)
    mean = jnp.mean(h, axis=-1, keepdims=True)
    mean2 = jnp.mean(h * h, axis=-1, keepdims=True)       # E[x^2] - mean^2
    var = jnp.maximum(mean2 - mean * mean, 0.0)
    o_ref[...] = (
        (h - mean) * jax.lax.rsqrt(var + 1e-12) * g_ref[...] + b_ref[...]
    ).astype(o_ref.dtype)


def _qkv_kernel(x_ref, wq_ref, wk_ref, wv_ref, bq_ref, bk_ref, bv_ref,
                q_ref, k_ref, v_ref):
    # x: [tm, H] bf16; one load of x feeds all three projections.
    x = x_ref[...]
    q_ref[...] = (jnp.dot(x, wq_ref[...], preferred_element_type=jnp.float32)
                  + bq_ref[...]).astype(q_ref.dtype)
    k_ref[...] = (jnp.dot(x, wk_ref[...], preferred_element_type=jnp.float32)
                  + bk_ref[...]).astype(k_ref.dtype)
    v_ref[...] = (jnp.dot(x, wv_ref[...], preferred_element_type=jnp.float32)
                  + bv_ref[...]).astype(v_ref.dtype)


def _attention_kernel(q_ref, k_ref, v_ref, m_ref, o_ref, *,
                      num_heads, head_dim, scale):
    # One batch element per grid step.  Blocks: q/k/v/o [1, S, H] bf16
    # (lane-dense), mask [1, 1, S] f32 (additive key mask).  Heads are split
    # along the lane axis *inside* the kernel — VMEM-only slices, so the
    # HBM-facing blocks stay lane-dense and no XLA transposes are needed.
    q = q_ref[0]
    k = k_ref[0]
    v = v_ref[0]
    bias = m_ref[0]                       # [1, S] -> broadcasts over queries
    outs = []
    for h in range(num_heads):
        sl = slice(h * head_dim, (h + 1) * head_dim)
        qh = q[:, sl]
        kh = k[:, sl]
        vh = v[:, sl]
        s = jax.lax.dot_general(
            qh, kh, (((1,), (1,)), ((), ())),
            preferred_element_type=jnp.float32) * scale
        s = s + bias
        s_max = jnp.max(s, axis=-1, keepdims=True)
        p = jnp.exp(s - s_max)
        inv = pl.reciprocal(jnp.sum(p, axis=-1, keepdims=True), approx=True)
        p = (p * inv).astype(v_ref.dtype)
        outs.append(jnp.dot(p, vh, preferred_element_type=jnp.float32))
    o_ref[0] = jnp.concatenate(outs, axis=-1).astype(o_ref.dtype)


def _linear_add_ln_kernel(x_ref, w_ref, b_ref, res_ref, g_ref, beta_ref, o_ref):
    # Fused: (x @ w + b) + residual, then LayerNorm.  bf16 in/out, f32 math.
    h = (jnp.dot(x_ref[...], w_ref[...], preferred_element_type=jnp.float32)
         + b_ref[...] + res_ref[...].astype(jnp.float32))
    mean = jnp.mean(h, axis=-1, keepdims=True)
    mean2 = jnp.mean(h * h, axis=-1, keepdims=True)
    var = jnp.maximum(mean2 - mean * mean, 0.0)
    o_ref[...] = (
        (h - mean) * jax.lax.rsqrt(var + 1e-12) * g_ref[...] + beta_ref[...]
    ).astype(o_ref.dtype)


def _ffn_kernel(x_ref, w1_ref, b1_ref, w2_ref, b2_ref, g_ref, beta_ref, o_ref):
    # Fused FFN: gelu(x @ w1 + b1) @ w2 + b2 + x, then LayerNorm.
    # The [tm, I] GELU intermediate lives only in VMEM.
    x = x_ref[...]
    h = jnp.dot(x, w1_ref[...], preferred_element_type=jnp.float32) + b1_ref[...]
    c = jnp.float32(0.7978845608028654)   # sqrt(2/pi), tanh-approx GELU
    h = 0.5 * h * (1.0 + jnp.tanh(c * (h + 0.044715 * h * h * h)))
    y = (jnp.dot(h.astype(jnp.bfloat16), w2_ref[...],
                 preferred_element_type=jnp.float32)
         + b2_ref[...] + x.astype(jnp.float32))
    mean = jnp.mean(y, axis=-1, keepdims=True)
    mean2 = jnp.mean(y * y, axis=-1, keepdims=True)
    var = jnp.maximum(mean2 - mean * mean, 0.0)
    o_ref[...] = (
        (y - mean) * jax.lax.rsqrt(var + 1e-12) * g_ref[...] + beta_ref[...]
    ).astype(o_ref.dtype)


def _classifier_loss_kernel(x_ref, w_ref, b_ref, gold_ref, mask_ref,
                            logits_ref, acc_ref):
    # x: [tm, H] bf16, w: [H, 128] bf16 (tags padded to 128 lanes),
    # b: [1, 128] f32 (padded columns = -1e30), gold/mask: [tm, 1].
    # Outputs: lane-dense logits [tm, 128] and a resident [1, 128] accumulator
    # carrying (sum of masked CE, count of masked positions) in lanes 0/1.
    logits = (jnp.dot(x_ref[...], w_ref[...],
                      preferred_element_type=jnp.float32) + b_ref[...])
    logits_ref[...] = logits

    m = jnp.max(logits, axis=-1, keepdims=True)
    lse = m + jnp.log(jnp.sum(jnp.exp(logits - m), axis=-1, keepdims=True))
    col = jax.lax.broadcasted_iota(jnp.int32, logits.shape, 1)
    gold_logit = jnp.sum(
        jnp.where(col == gold_ref[...], logits, 0.0), axis=-1, keepdims=True
    )
    mask = mask_ref[...]
    ce_sum = jnp.sum((lse - gold_logit) * mask)
    cnt = jnp.sum(mask)

    lane = jax.lax.broadcasted_iota(jnp.int32, acc_ref.shape, 1)
    contrib = jnp.where(lane == 0, ce_sum, jnp.where(lane == 1, cnt, 0.0))

    @pl.when(pl.program_id(0) == 0)
    def _():
        acc_ref[...] = jnp.zeros_like(acc_ref)

    acc_ref[...] += contrib


# ---------------------------------------------------------------------------
# pallas_call wrappers
# ---------------------------------------------------------------------------
def pallas_layernorm(x, g, b, out_dtype=jnp.bfloat16):
    M, H = x.shape
    tm = _row_tile(M, _ROW_TILE_NARROW)
    row = pl.BlockSpec((tm, H), lambda i: (i, 0))
    return pl.pallas_call(
        _layernorm_kernel,
        grid=(M // tm,),
        in_specs=[row, _const_spec((1, H)), _const_spec((1, H))],
        out_specs=row,
        out_shape=jax.ShapeDtypeStruct((M, H), out_dtype),
        compiler_params=_cparams(("parallel",)),
    )(x, g, b)


def pallas_qkv(x, wq, wk, wv, bq, bk, bv):
    M, H = x.shape
    tm = _row_tile(M, _ROW_TILE_NARROW)
    row = pl.BlockSpec((tm, H), lambda i: (i, 0))
    out = jax.ShapeDtypeStruct((M, H), jnp.bfloat16)
    return pl.pallas_call(
        _qkv_kernel,
        grid=(M // tm,),
        in_specs=[row,
                  _const_spec((H, H)), _const_spec((H, H)), _const_spec((H, H)),
                  _const_spec((1, H)), _const_spec((1, H)), _const_spec((1, H))],
        out_specs=(row, row, row),
        out_shape=(out, out, out),
        compiler_params=_cparams(("parallel",)),
    )(x, wq, wk, wv, bq, bk, bv)


def pallas_attention(q, k, v, add_mask, num_heads, head_dim, scale):
    # q/k/v: [B, S, H] bf16; add_mask: [B, 1, S] f32 additive key mask.
    B, S, H = q.shape
    qkv_spec = pl.BlockSpec((1, S, H), lambda b: (b, 0, 0))
    return pl.pallas_call(
        functools.partial(_attention_kernel, num_heads=num_heads,
                          head_dim=head_dim, scale=scale),
        grid=(B,),
        in_specs=[qkv_spec, qkv_spec, qkv_spec,
                  pl.BlockSpec((1, 1, S), lambda b: (b, 0, 0))],
        out_specs=pl.BlockSpec((1, S, H), lambda b: (b, 0, 0)),
        out_shape=jax.ShapeDtypeStruct((B, S, H), jnp.bfloat16),
        compiler_params=_cparams(("parallel",)),
    )(q, k, v, add_mask)


def pallas_attn_out_ln(ctx, wo, bo, res, g, beta):
    M, H = ctx.shape
    tm = _row_tile(M, _ROW_TILE_NARROW)
    row = pl.BlockSpec((tm, H), lambda i: (i, 0))
    return pl.pallas_call(
        _linear_add_ln_kernel,
        grid=(M // tm,),
        in_specs=[row, _const_spec((H, H)), _const_spec((1, H)), row,
                  _const_spec((1, H)), _const_spec((1, H))],
        out_specs=row,
        out_shape=jax.ShapeDtypeStruct((M, H), jnp.bfloat16),
        compiler_params=_cparams(("parallel",)),
    )(ctx, wo, bo, res, g, beta)


def pallas_ffn(x, w1, b1, w2, b2, g, beta):
    M, H = x.shape
    I = w1.shape[1]
    tm = _row_tile(M, _ROW_TILE_WIDE)
    row = pl.BlockSpec((tm, H), lambda i: (i, 0))
    return pl.pallas_call(
        _ffn_kernel,
        grid=(M // tm,),
        in_specs=[row,
                  _const_spec((H, I)), _const_spec((1, I)),
                  _const_spec((I, H)), _const_spec((1, H)),
                  _const_spec((1, H)), _const_spec((1, H))],
        out_specs=row,
        out_shape=jax.ShapeDtypeStruct((M, H), jnp.bfloat16),
        compiler_params=_cparams(("parallel",)),
    )(x, w1, b1, w2, b2, g, beta)


def pallas_classifier_loss(x, w_pad, b_pad, gold, mask_f):
    M, H = x.shape
    TP = w_pad.shape[1]
    tm = _row_tile(M, _ROW_TILE_NARROW)
    return pl.pallas_call(
        _classifier_loss_kernel,
        grid=(M // tm,),
        in_specs=[pl.BlockSpec((tm, H), lambda i: (i, 0)),
                  _const_spec((H, TP)),
                  _const_spec((1, TP)),
                  pl.BlockSpec((tm, 1), lambda i: (i, 0)),
                  pl.BlockSpec((tm, 1), lambda i: (i, 0))],
        out_specs=(pl.BlockSpec((tm, TP), lambda i: (i, 0)),
                   pl.BlockSpec((1, TP), lambda i: (0, 0))),  # resident acc
        out_shape=(jax.ShapeDtypeStruct((M, TP), jnp.float32),
                   jax.ShapeDtypeStruct((1, TP), jnp.float32)),
        compiler_params=_cparams(("arbitrary",)),
    )(x, w_pad, b_pad, gold, mask_f)


# ---------------------------------------------------------------------------
# Parameter init (deterministic synthetic stand-in for bert-base-cased)
# ---------------------------------------------------------------------------
def init_params(key, cfg):
    H, I, T = cfg["hidden"], cfg["intermediate"], cfg["num_tags"]
    TP = cfg["num_tags_padded"]
    keys = iter(jax.random.split(key, 128))

    def w_bf16(k_in, k_out):
        return (jax.random.normal(next(keys), (k_in, k_out), jnp.float32)
                * 0.02).astype(jnp.bfloat16)

    params = dict(
        word_emb=jax.random.normal(next(keys), (cfg["vocab"], H), jnp.float32) * 0.02,
        pos_emb=jax.random.normal(next(keys), (cfg["max_pos"], H), jnp.float32) * 0.02,
        type_emb=jax.random.normal(next(keys), (2, H), jnp.float32) * 0.02,
        emb_ln_g=jnp.ones((1, H), jnp.float32),
        emb_ln_b=jnp.zeros((1, H), jnp.float32),
    )
    layers = []
    for _ in range(cfg["layers"]):
        layers.append(dict(
            wq=w_bf16(H, H), wk=w_bf16(H, H), wv=w_bf16(H, H),
            bq=jnp.zeros((1, H), jnp.float32),
            bk=jnp.zeros((1, H), jnp.float32),
            bv=jnp.zeros((1, H), jnp.float32),
            wo=w_bf16(H, H), bo=jnp.zeros((1, H), jnp.float32),
            w1=w_bf16(H, I), b1=jnp.zeros((1, I), jnp.float32),
            w2=w_bf16(I, H), b2=jnp.zeros((1, H), jnp.float32),
            ln1_g=jnp.ones((1, H), jnp.float32),
            ln1_b=jnp.zeros((1, H), jnp.float32),
            ln2_g=jnp.ones((1, H), jnp.float32),
            ln2_b=jnp.zeros((1, H), jnp.float32),
        ))
    params["layers"] = layers

    # Classifier, tag axis padded to 128 lanes.  Padded columns get zero
    # weight and a -1e30 bias so they never win argmax and add 0 to the LSE.
    cls_w = jax.random.normal(next(keys), (H, T), jnp.float32) * 0.02
    cls_w_pad = jnp.zeros((H, TP), jnp.float32).at[:, :T].set(cls_w)
    cls_b_pad = jnp.full((1, TP), -1e30, jnp.float32).at[:, :T].set(0.0)
    params["cls_w"] = cls_w_pad.astype(jnp.bfloat16)
    params["cls_b"] = cls_b_pad
    return params


# ---------------------------------------------------------------------------
# Forward == BertEncoderRanker.forward: (loss, ctxt_tags, ctxt_logits)
# ---------------------------------------------------------------------------
def bert_encoder_ranker_forward(params, token_ids, mask_ctxt, golden_tags, cfg):
    B, S = token_ids.shape
    H, Hn, T = cfg["hidden"], cfg["heads"], cfg["num_tags"]
    Dh = H // Hn
    M = B * S

    # Embeddings (gathers are XLA glue) + embedding LayerNorm kernel (bf16 out).
    emb = (params["word_emb"][token_ids]
           + params["pos_emb"][:S][None, :, :]
           + params["type_emb"][0][None, None, :])
    x = pallas_layernorm(emb.reshape(M, H), params["emb_ln_g"], params["emb_ln_b"])

    # Additive key mask [B, 1, S] — broadcast in-kernel, never [B*Hn, S, S].
    add_mask = ((1.0 - mask_ctxt.astype(jnp.float32)) * -1e9).reshape(B, 1, S)
    scale = 1.0 / (Dh ** 0.5)

    for layer in params["layers"]:
        # Q/K/V projections in one kernel (x read once); [M, H] bf16 outputs.
        q, k, v = pallas_qkv(x, layer["wq"], layer["wk"], layer["wv"],
                             layer["bq"], layer["bk"], layer["bv"])
        # [M, H] -> [B, S, H] is a free leading-dim reshape (no transpose).
        ctx = pallas_attention(q.reshape(B, S, H), k.reshape(B, S, H),
                               v.reshape(B, S, H), add_mask, Hn, Dh, scale)
        # Fused: output projection + residual + LayerNorm.
        x = pallas_attn_out_ln(ctx.reshape(M, H), layer["wo"], layer["bo"],
                               x, layer["ln1_g"], layer["ln1_b"])
        # Fully fused FFN: w1 + GELU + w2 + residual + LayerNorm.
        x = pallas_ffn(x, layer["w1"], layer["b1"], layer["w2"], layer["b2"],
                       layer["ln2_g"], layer["ln2_b"])

    # Fused classifier + masked mean cross-entropy.
    gold = golden_tags.astype(jnp.int32).reshape(M, 1)
    mask_f = mask_ctxt.astype(jnp.float32).reshape(M, 1)
    logits_pad, acc = pallas_classifier_loss(
        x, params["cls_w"], params["cls_b"], gold, mask_f
    )
    real_logits = logits_pad[:, :T]
    ctxt_logits = real_logits.reshape(B, S, T)
    ctxt_tags = jnp.argmax(real_logits, axis=-1).astype(jnp.int32).reshape(B, S)
    # Guard against an all-masked batch (PyTorch would produce NaN there).
    loss = acc[0, 0] / jnp.maximum(acc[0, 1], 1.0)
    return loss, ctxt_tags, ctxt_logits


if __name__ == "__main__":
    cfg = dict(
        vocab=50,
        max_pos=16,
        hidden=32,
        heads=4,
        intermediate=64,
        layers=2,
        num_tags=9,  # ['B-PER','I-PER','B-LOC','I-LOC','B-ORG','I-ORG','B-MISC','I-MISC','O']
        num_tags_padded=128,  # lane-dense classifier output
    )
    B, S = 2, 8

    root = jax.random.PRNGKey(0)
    k_params, k_tok, k_tags = jax.random.split(root, 3)

    params = init_params(k_params, cfg)
    token_idx_ctxt = jax.random.randint(k_tok, (B, S), 0, cfg["vocab"], jnp.int32)
    mask_ctxt = jnp.array(
        [[1, 1, 1, 1, 1, 1, 1, 1], [1, 1, 1, 1, 1, 0, 0, 0]], dtype=jnp.int32
    )
    golden_tags = jax.random.randint(k_tags, (B, S), 0, cfg["num_tags"], jnp.int32)

    fwd = jax.jit(functools.partial(bert_encoder_ranker_forward, cfg=cfg))
    loss, tags, logits = fwd(params, token_idx_ctxt, mask_ctxt, golden_tags)
    jax.block_until_ready((loss, tags, logits))

    assert logits.shape == (B, S, cfg["num_tags"])
    assert tags.shape == (B, S)
    assert loss.shape == ()
    assert bool(jnp.isfinite(loss))
    print("KERNEL_OK")
</pallas_src>

<mosaic_0001>
module attributes {stable_mosaic.version = 11 : i64} {
  func.func @_k(%arg0: i32, %arg1: memref<8x128xf32, #tpu.memory_space<vmem>>, %arg2: memref<8x128xf32, #tpu.memory_space<vmem>>) attributes {dimension_semantics = [#tpu.dimension_semantics<arbitrary>], iteration_bounds = array<i64: 2>, scalar_prefetch = 0 : i64, scratch_operands = 0 : i64, tpu.core_type = #tpu.core_type<tc>, window_params = [{pipeline_mode = #tpu.pipeline_mode<synchronous>, transform_indices = @transform_0, window_bounds = array<i64: 8, 128>}, {transform_indices = @transform_1, window_bounds = array<i64: 8, 128>}]} {
    %c0 = arith.constant 0 : index
    %c0_0 = arith.constant 0 : index
    %0 = vector.load %arg1[%c0, %c0_0] : memref<8x128xf32, #tpu.memory_space<vmem>>, vector<8x128xf32>
    %cst = arith.constant 1.000000e+00 : f32
    %1 = vector.broadcast %cst : f32 to vector<8x128xf32>
    %2 = arith.addf %0, %1 : vector<8x128xf32>
    %c0_1 = arith.constant 0 : index
    %c0_2 = arith.constant 0 : index
    %3 = vector.load %arg2[%c0_1, %c0_2] : memref<8x128xf32, #tpu.memory_space<vmem>>, vector<8x128xf32>
    tpu.vector_store %arg2[%c0_1, %c0_2], %2 {strides = array<i32>} : memref<8x128xf32, #tpu.memory_space<vmem>>, vector<8x128xf32>,
    return
  }
  func.func @transform_0(%arg0: i32) -> (i32, i32) {
    %c0_i32 = arith.constant 0 : i32
    %c0_i32_0 = arith.constant 0 : i32
    %c0_i32_1 = arith.constant 0 : i32
    return %c0_i32, %c0_i32_0 : i32, i32
  }
  func.func @transform_1(%arg0: i32) -> (i32, i32) {
    %c0_i32 = arith.constant 0 : i32
    %c0_i32_0 = arith.constant 0 : i32
    return %arg0, %c0_i32 : i32, i32
  }
}

module attributes {stable_mosaic.version = 11 : i64} {
  func.func @_linear_add_ln_kernel(%arg0: i32, %arg1: memref<16x32xbf16, #tpu.memory_space<vmem>>, %arg2: memref<32x32xbf16, #tpu.memory_space<vmem>>, %arg3: memref<1x32xf32, #tpu.memory_space<vmem>>, %arg4: memref<16x32xbf16, #tpu.memory_space<vmem>>, %arg5: memref<1x32xf32, #tpu.memory_space<vmem>>, %arg6: memref<1x32xf32, #tpu.memory_space<vmem>>, %arg7: memref<16x32xbf16, #tpu.memory_space<vmem>>) attributes {dimension_semantics = [#tpu.dimension_semantics<parallel>], iteration_bounds = array<i64: 1>, scalar_prefetch = 0 : i64, scratch_operands = 0 : i64, tpu.core_type = #tpu.core_type<tc>, window_params = [{transform_indices = @transform_0, window_bounds = array<i64: 16, 32>}, {pipeline_mode = #tpu.pipeline_mode<synchronous>, transform_indices = @transform_1, window_bounds = array<i64: 32, 32>}, {pipeline_mode = #tpu.pipeline_mode<synchronous>, transform_indices = @transform_2, window_bounds = array<i64: 1, 32>}, {transform_indices = @transform_3, window_bounds = array<i64: 16, 32>}, {pipeline_mode = #tpu.pipeline_mode<synchronous>, transform_indices = @transform_4, window_bounds = array<i64: 1, 32>}, {pipeline_mode = #tpu.pipeline_mode<synchronous>, transform_indices = @transform_5, window_bounds = array<i64: 1, 32>}, {transform_indices = @transform_6, window_bounds = array<i64: 16, 32>}]} {
    %c0 = arith.constant 0 : index
    %c0_0 = arith.constant 0 : index
    %0 = vector.load %arg1[%c0, %c0_0] : memref<16x32xbf16, #tpu.memory_space<vmem>>, vector<16x32xbf16>
    %c0_1 = arith.constant 0 : index
    %c0_2 = arith.constant 0 : index
    %1 = vector.load %arg2[%c0_1, %c0_2] : memref<32x32xbf16, #tpu.memory_space<vmem>>, vector<32x32xbf16>
    %cst = arith.constant dense<0.000000e+00> : vector<16x32xf32>
    %2 = tpu.matmul %0, %1, %cst {dimension_numbers = #tpu.dot_dimension_numbers<[1], [0], [0], [1], [0, 0, 1, 1], [], []>} : vector<16x32xbf16>, vector<32x32xbf16>, vector<16x32xf32> -> vector<16x32xf32>
    %c0_3 = arith.constant 0 : index
    %c0_4 = arith.constant 0 : index
    %3 = vector.load %arg3[%c0_3, %c0_4] : memref<1x32xf32, #tpu.memory_space<vmem>>, vector<1x32xf32>
    %4 = vector.broadcast %3 : vector<1x32xf32> to vector<16x32xf32>
    %5 = arith.addf %2, %4 : vector<16x32xf32>
    %c0_5 = arith.constant 0 : index
    %c0_6 = arith.constant 0 : index
    %6 = vector.load %arg4[%c0_5, %c0_6] : memref<16x32xbf16, #tpu.memory_space<vmem>>, vector<16x32xbf16>
    %7 = arith.extf %6 : vector<16x32xbf16> to vector<16x32xf32>
    %8 = arith.addf %5, %7 : vector<16x32xf32>
    %cst_7 = arith.constant dense<0.000000e+00> : vector<16xf32>
    %9 = vector.multi_reduction <add>, %8, %cst_7 [1] : vector<16x32xf32> to vector<16xf32>
    %10 = vector.shape_cast %9 : vector<16xf32> to vector<16x1xf32>
    %cst_8 = arith.constant 3.200000e+01 : f32
    %11 = vector.broadcast %cst_8 : f32 to vector<16x1xf32>
    %12 = arith.divf %10, %11 : vector<16x1xf32>
    %13 = arith.mulf %8, %8 : vector<16x32xf32>
    %cst_9 = arith.constant dense<0.000000e+00> : vector<16xf32>
    %14 = vector.multi_reduction <add>, %13, %cst_9 [1] : vector<16x32xf32> to vector<16xf32>
    %15 = vector.shape_cast %14 : vector<16xf32> to vector<16x1xf32>
    %cst_10 = arith.constant 3.200000e+01 : f32
    %16 = vector.broadcast %cst_10 : f32 to vector<16x1xf32>
    %17 = arith.divf %15, %16 : vector<16x1xf32>
    %18 = arith.mulf %12, %12 : vector<16x1xf32>
    %19 = arith.subf %17, %18 : vector<16x1xf32>
    %cst_11 = arith.constant 0.000000e+00 : f32
    %20 = vector.broadcast %cst_11 : f32 to vector<16x1xf32>
    %21 = arith.maximumf %19, %20 : vector<16x1xf32>
    %22 = vector.broadcast %12 : vector<16x1xf32> to vector<16x32xf32>
    %23 = arith.subf %8, %22 : vector<16x32xf32>
    %cst_12 = arith.constant 9.99999996E-13 : f32
    %24 = vector.broadcast %cst_12 : f32 to vector<16x1xf32>
    %25 = arith.addf %21, %24 : vector<16x1xf32>
    %26 = math.rsqrt %25 : vector<16x1xf32>
    %27 = vector.broadcast %26 : vector<16x1xf32> to vector<16x32xf32>
    %28 = arith.mulf %23, %27 : vector<16x32xf32>
    %c0_13 = arith.constant 0 : index
    %c0_14 = arith.constant 0 : index
    %29 = vector.load %arg5[%c0_13, %c0_14] : memref<1x32xf32, #tpu.memory_space<vmem>>, vector<1x32xf32>
    %30 = vector.broadcast %29 : vector<1x32xf32> to vector<16x32xf32>
    %31 = arith.mulf %28, %30 : vector<16x32xf32>
    %c0_15 = arith.constant 0 : index
    %c0_16 = arith.constant 0 : index
    %32 = vector.load %arg6[%c0_15, %c0_16] : memref<1x32xf32, #tpu.memory_space<vmem>>, vector<1x32xf32>
    %33 = vector.broadcast %32 : vector<1x32xf32> to vector<16x32xf32>
    %34 = arith.addf %31, %33 : vector<16x32xf32>
    %35 = arith.truncf %34 : vector<16x32xf32> to vector<16x32xbf16>
    %c0_17 = arith.constant 0 : index
    %c0_18 = arith.constant 0 : index
    %36 = vector.load %arg7[%c0_17, %c0_18] : memref<16x32xbf16, #tpu.memory_space<vmem>>, vector<16x32xbf16>
    tpu.vector_store %arg7[%c0_17, %c0_18], %35 {strides = array<i32>} : memref<16x32xbf16, #tpu.memory_space<vmem>>, vector<16x32xbf16>,
    return
  }
  func.func @transform_0(%arg0: i32) -> (i32, i32) {
    %c0_i32 = arith.constant 0 : i32
    %c0_i32_0 = arith.constant 0 : i32
    return %arg0, %c0_i32 : i32, i32
  }
  func.func @transform_1(%arg0: i32) -> (i32, i32) {
    %c0_i32 = arith.constant 0 : i32
    %c0_i32_0 = arith.constant 0 : i32
    %c0_i32_1 = arith.constant 0 : i32
    return %c0_i32, %c0_i32_0 : i32, i32
  }
  func.func @transform_2(%arg0: i32) -> (i32, i32) {
    %c0_i32 = arith.constant 0 : i32
    %c0_i32_0 = arith.constant 0 : i32
    %c0_i32_1 = arith.constant 0 : i32
    return %c0_i32, %c0_i32_0 : i32, i32
  }
  func.func @transform_3(%arg0: i32) -> (i32, i32) {
    %c0_i32 = arith.constant 0 : i32
    %c0_i32_0 = arith.constant 0 : i32
    return %arg0, %c0_i32 : i32, i32
  }
  func.func @transform_4(%arg0: i32) -> (i32, i32) {
    %c0_i32 = arith.constant 0 : i32
    %c0_i32_0 = arith.constant 0 : i32
    %c0_i32_1 = arith.constant 0 : i32
    return %c0_i32, %c0_i32_0 : i32, i32
  }
  func.func @transform_5(%arg0: i32) -> (i32, i32) {
    %c0_i32 = arith.constant 0 : i32
    %c0_i32_0 = arith.constant 0 : i32
    %c0_i32_1 = arith.constant 0 : i32
    return %c0_i32, %c0_i32_0 : i32, i32
  }
  func.func @transform_6(%arg0: i32) -> (i32, i32) {
    %c0_i32 = arith.constant 0 : i32
    %c0_i32_0 = arith.constant 0 : i32
    return %arg0, %c0_i32 : i32, i32
  }
}

module attributes {stable_mosaic.version = 11 : i64} {
  func.func @_layernorm_kernel(%arg0: i32, %arg1: memref<16x32xf32, #tpu.memory_space<vmem>>, %arg2: memref<1x32xf32, #tpu.memory_space<vmem>>, %arg3: memref<1x32xf32, #tpu.memory_space<vmem>>, %arg4: memref<16x32xbf16, #tpu.memory_space<vmem>>) attributes {dimension_semantics = [#tpu.dimension_semantics<parallel>], iteration_bounds = array<i64: 1>, scalar_prefetch = 0 : i64, scratch_operands = 0 : i64, tpu.core_type = #tpu.core_type<tc>, window_params = [{transform_indices = @transform_0, window_bounds = array<i64: 16, 32>}, {pipeline_mode = #tpu.pipeline_mode<synchronous>, transform_indices = @transform_1, window_bounds = array<i64: 1, 32>}, {pipeline_mode = #tpu.pipeline_mode<synchronous>, transform_indices = @transform_2, window_bounds = array<i64: 1, 32>}, {transform_indices = @transform_3, window_bounds = array<i64: 16, 32>}]} {
    %c0 = arith.constant 0 : index
    %c0_0 = arith.constant 0 : index
    %0 = vector.load %arg1[%c0, %c0_0] : memref<16x32xf32, #tpu.memory_space<vmem>>, vector<16x32xf32>
    %cst = arith.constant dense<0.000000e+00> : vector<16xf32>
    %1 = vector.multi_reduction <add>, %0, %cst [1] : vector<16x32xf32> to vector<16xf32>
    %2 = vector.shape_cast %1 : vector<16xf32> to vector<16x1xf32>
    %cst_1 = arith.constant 3.200000e+01 : f32
    %3 = vector.broadcast %cst_1 : f32 to vector<16x1xf32>
    %4 = arith.divf %2, %3 : vector<16x1xf32>
    %5 = arith.mulf %0, %0 : vector<16x32xf32>
    %cst_2 = arith.constant dense<0.000000e+00> : vector<16xf32>
    %6 = vector.multi_reduction <add>, %5, %cst_2 [1] : vector<16x32xf32> to vector<16xf32>
    %7 = vector.shape_cast %6 : vector<16xf32> to vector<16x1xf32>
    %cst_3 = arith.constant 3.200000e+01 : f32
    %8 = vector.broadcast %cst_3 : f32 to vector<16x1xf32>
    %9 = arith.divf %7, %8 : vector<16x1xf32>
    %10 = arith.mulf %4, %4 : vector<16x1xf32>
    %11 = arith.subf %9, %10 : vector<16x1xf32>
    %cst_4 = arith.constant 0.000000e+00 : f32
    %12 = vector.broadcast %cst_4 : f32 to vector<16x1xf32>
    %13 = arith.maximumf %11, %12 : vector<16x1xf32>
    %14 = vector.broadcast %4 : vector<16x1xf32> to vector<16x32xf32>
    %15 = arith.subf %0, %14 : vector<16x32xf32>
    %cst_5 = arith.constant 9.99999996E-13 : f32
    %16 = vector.broadcast %cst_5 : f32 to vector<16x1xf32>
    %17 = arith.addf %13, %16 : vector<16x1xf32>
    %18 = math.rsqrt %17 : vector<16x1xf32>
    %19 = vector.broadcast %18 : vector<16x1xf32> to vector<16x32xf32>
    %20 = arith.mulf %15, %19 : vector<16x32xf32>
    %c0_6 = arith.constant 0 : index
    %c0_7 = arith.constant 0 : index
    %21 = vector.load %arg2[%c0_6, %c0_7] : memref<1x32xf32, #tpu.memory_space<vmem>>, vector<1x32xf32>
    %22 = vector.broadcast %21 : vector<1x32xf32> to vector<16x32xf32>
    %23 = arith.mulf %20, %22 : vector<16x32xf32>
    %c0_8 = arith.constant 0 : index
    %c0_9 = arith.constant 0 : index
    %24 = vector.load %arg3[%c0_8, %c0_9] : memref<1x32xf32, #tpu.memory_space<vmem>>, vector<1x32xf32>
    %25 = vector.broadcast %24 : vector<1x32xf32> to vector<16x32xf32>
    %26 = arith.addf %23, %25 : vector<16x32xf32>
    %27 = arith.truncf %26 : vector<16x32xf32> to vector<16x32xbf16>
    %c0_10 = arith.constant 0 : index
    %c0_11 = arith.constant 0 : index
    %28 = vector.load %arg4[%c0_10, %c0_11] : memref<16x32xbf16, #tpu.memory_space<vmem>>, vector<16x32xbf16>
    tpu.vector_store %arg4[%c0_10, %c0_11], %27 {strides = array<i32>} : memref<16x32xbf16, #tpu.memory_space<vmem>>, vector<16x32xbf16>,
    return
  }
  func.func @transform_0(%arg0: i32) -> (i32, i32) {
    %c0_i32 = arith.constant 0 : i32
    %c0_i32_0 = arith.constant 0 : i32
    return %arg0, %c0_i32 : i32, i32
  }
  func.func @transform_1(%arg0: i32) -> (i32, i32) {
    %c0_i32 = arith.constant 0 : i32
    %c0_i32_0 = arith.constant 0 : i32
    %c0_i32_1 = arith.constant 0 : i32
    return %c0_i32, %c0_i32_0 : i32, i32
  }
  func.func @transform_2(%arg0: i32) -> (i32, i32) {
    %c0_i32 = arith.constant 0 : i32
    %c0_i32_0 = arith.constant 0 : i32
    %c0_i32_1 = arith.constant 0 : i32
    return %c0_i32, %c0_i32_0 : i32, i32
  }
  func.func @transform_3(%arg0: i32) -> (i32, i32) {
    %c0_i32 = arith.constant 0 : i32
    %c0_i32_0 = arith.constant 0 : i32
    return %arg0, %c0_i32 : i32, i32
  }
}

module attributes {stable_mosaic.version = 11 : i64} {
  func.func @_attention_kernel(%arg0: i32, %arg1: memref<1x8x32xbf16, #tpu.memory_space<vmem>>, %arg2: memref<1x8x32xbf16, #tpu.memory_space<vmem>>, %arg3: memref<1x8x32xbf16, #tpu.memory_space<vmem>>, %arg4: memref<1x1x8xf32, #tpu.memory_space<vmem>>, %arg5: memref<1x8x32xbf16, #tpu.memory_space<vmem>>) attributes {dimension_semantics = [#tpu.dimension_semantics<parallel>], iteration_bounds = array<i64: 2>, scalar_prefetch = 0 : i64, scratch_operands = 0 : i64, tpu.core_type = #tpu.core_type<tc>, window_params = [{transform_indices = @transform_0, window_bounds = array<i64: 1, 8, 32>}, {transform_indices = @transform_1, window_bounds = array<i64: 1, 8, 32>}, {transform_indices = @transform_2, window_bounds = array<i64: 1, 8, 32>}, {transform_indices = @transform_3, window_bounds = array<i64: 1, 1, 8>}, {transform_indices = @transform_4, window_bounds = array<i64: 1, 8, 32>}]} {
    %c0 = arith.constant 0 : index
    %c0_0 = arith.constant 0 : index
    %c0_1 = arith.constant 0 : index
    %0 = vector.load %arg1[%c0, %c0_0, %c0_1] : memref<1x8x32xbf16, #tpu.memory_space<vmem>>, vector<1x8x32xbf16>
    %1 = vector.shape_cast %0 : vector<1x8x32xbf16> to vector<8x32xbf16>
    %c0_2 = arith.constant 0 : index
    %c0_3 = arith.constant 0 : index
    %c0_4 = arith.constant 0 : index
    %2 = vector.load %arg2[%c0_2, %c0_3, %c0_4] : memref<1x8x32xbf16, #tpu.memory_space<vmem>>, vector<1x8x32xbf16>
    %3 = vector.shape_cast %2 : vector<1x8x32xbf16> to vector<8x32xbf16>
    %c0_5 = arith.constant 0 : index
    %c0_6 = arith.constant 0 : index
    %c0_7 = arith.constant 0 : index
    %4 = vector.load %arg3[%c0_5, %c0_6, %c0_7] : memref<1x8x32xbf16, #tpu.memory_space<vmem>>, vector<1x8x32xbf16>
    %5 = vector.shape_cast %4 : vector<1x8x32xbf16> to vector<8x32xbf16>
    %c0_8 = arith.constant 0 : index
    %c0_9 = arith.constant 0 : index
    %c0_10 = arith.constant 0 : index
    %6 = vector.load %arg4[%c0_8, %c0_9, %c0_10] : memref<1x1x8xf32, #tpu.memory_space<vmem>>, vector<1x1x8xf32>
    %7 = vector.shape_cast %6 : vector<1x1x8xf32> to vector<1x8xf32>
    %8 = vector.extract_strided_slice %1 {offsets = [0, 0], sizes = [8, 8], strides = [1, 1]} : vector<8x32xbf16> to vector<8x8xbf16>
    %9 = vector.extract_strided_slice %3 {offsets = [0, 0], sizes = [8, 8], strides = [1, 1]} : vector<8x32xbf16> to vector<8x8xbf16>
    %10 = vector.extract_strided_slice %5 {offsets = [0, 0], sizes = [8, 8], strides = [1, 1]} : vector<8x32xbf16> to vector<8x8xbf16>
    %cst = arith.constant dense<0.000000e+00> : vector<8x8xf32>
    %11 = tpu.matmul %8, %9, %cst {dimension_numbers = #tpu.dot_dimension_numbers<[1], [1], [0], [0], [0, 0, 1, 0], [], []>} : vector<8x8xbf16>, vector<8x8xbf16>, vector<8x8xf32> -> vector<8x8xf32>
    %cst_11 = arith.constant 0.353553385 : f32
    %12 = vector.broadcast %cst_11 : f32 to vector<8x8xf32>
    %13 = arith.mulf %11, %12 : vector<8x8xf32>
    %14 = vector.broadcast %7 : vector<1x8xf32> to vector<8x8xf32>
    %15 = arith.addf %13, %14 : vector<8x8xf32>
    %cst_12 = arith.constant dense<0xFF800000> : vector<8xf32>
    %16 = vector.multi_reduction <maximumf>, %15, %cst_12 [1] : vector<8x8xf32> to vector<8xf32>
    %17 = vector.shape_cast %16 : vector<8xf32> to vector<8x1xf32>
    %18 = vector.broadcast %17 : vector<8x1xf32> to vector<8x8xf32>
    %19 = arith.subf %15, %18 : vector<8x8xf32>
    %20 = math.exp %19 : vector<8x8xf32>
    %cst_13 = arith.constant dense<0.000000e+00> : vector<8xf32>
    %21 = vector.multi_reduction <add>, %20, %cst_13 [1] : vector<8x8xf32> to vector<8xf32>
    %22 = vector.shape_cast %21 : vector<8xf32> to vector<8x1xf32>
    %23 = tpu.reciprocal %22 {approx = true} : vector<8x1xf32> -> vector<8x1xf32>
    %24 = vector.broadcast %23 : vector<8x1xf32> to vector<8x8xf32>
    %25 = arith.mulf %20, %24 : vector<8x8xf32>
    %26 = arith.truncf %25 : vector<8x8xf32> to vector<8x8xbf16>
    %cst_14 = arith.constant dense<0.000000e+00> : vector<8x8xf32>
    %27 = tpu.matmul %26, %10, %cst_14 {dimension_numbers = #tpu.dot_dimension_numbers<[1], [0], [0], [1], [0, 0, 1, 1], [], []>} : vector<8x8xbf16>, vector<8x8xbf16>, vector<8x8xf32> -> vector<8x8xf32>
    %28 = vector.extract_strided_slice %1 {offsets = [0, 8], sizes = [8, 8], strides = [1, 1]} : vector<8x32xbf16> to vector<8x8xbf16>
    %29 = vector.extract_strided_slice %3 {offsets = [0, 8], sizes = [8, 8], strides = [1, 1]} : vector<8x32xbf16> to vector<8x8xbf16>
    %30 = vector.extract_strided_slice %5 {offsets = [0, 8], sizes = [8, 8], strides = [1, 1]} : vector<8x32xbf16> to vector<8x8xbf16>
    %cst_15 = arith.constant dense<0.000000e+00> : vector<8x8xf32>
    %31 = tpu.matmul %28, %29, %cst_15 {dimension_numbers = #tpu.dot_dimension_numbers<[1], [1], [0], [0], [0, 0, 1, 0], [], []>} : vector<8x8xbf16>, vector<8x8xbf16>, vector<8x8xf32> -> vector<8x8xf32>
    %cst_16 = arith.constant 0.353553385 : f32
    %32 = vector.broadcast %cst_16 : f32 to vector<8x8xf32>
    %33 = arith.mulf %31, %32 : vector<8x8xf32>
    %34 = vector.broadcast %7 : vector<1x8xf32> to vector<8x8xf32>
    %35 = arith.addf %33, %34 : vector<8x8xf32>
    %cst_17 = arith.constant dense<0xFF800000> : vector<8xf32>
    %36 = vector.multi_reduction <maximumf>, %35, %cst_17 [1] : vector<8x8xf32> to vector<8xf32>
    %37 = vector.shape_cast %36 : vector<8xf32> to vector<8x1xf32>
    %38 = vector.broadcast %37 : vector<8x1xf32> to vector<8x8xf32>
    %39 = arith.subf %35, %38 : vector<8x8xf32>
    %40 = math.exp %39 : vector<8x8xf32>
    %cst_18 = arith.constant dense<0.000000e+00> : vector<8xf32>
    %41 = vector.multi_reduction <add>, %40, %cst_18 [1] : vector<8x8xf32> to vector<8xf32>
    %42 = vector.shape_cast %41 : vector<8xf32> to vector<8x1xf32>
    %43 = tpu.reciprocal %42 {approx = true} : vector<8x1xf32> -> vector<8x1xf32>
    %44 = vector.broadcast %43 : vector<8x1xf32> to vector<8x8xf32>
    %45 = arith.mulf %40, %44 : vector<8x8xf32>
    %46 = arith.truncf %45 : vector<8x8xf32> to vector<8x8xbf16>
    %cst_19 = arith.constant dense<0.000000e+00> : vector<8x8xf32>
    %47 = tpu.matmul %46, %30, %cst_19 {dimension_numbers = #tpu.dot_dimension_numbers<[1], [0], [0], [1], [0, 0, 1, 1], [], []>} : vector<8x8xbf16>, vector<8x8xbf16>, vector<8x8xf32> -> vector<8x8xf32>
    %48 = vector.extract_strided_slice %1 {offsets = [0, 16], sizes = [8, 8], strides = [1, 1]} : vector<8x32xbf16> to vector<8x8xbf16>
    %49 = vector.extract_strided_slice %3 {offsets = [0, 16], sizes = [8, 8], strides = [1, 1]} : vector<8x32xbf16> to vector<8x8xbf16>
    %50 = vector.extract_strided_slice %5 {offsets = [0, 16], sizes = [8, 8], strides = [1, 1]} : vector<8x32xbf16> to vector<8x8xbf16>
    %cst_20 = arith.constant dense<0.000000e+00> : vector<8x8xf32>
    %51 = tpu.matmul %48, %49, %cst_20 {dimension_numbers = #tpu.dot_dimension_numbers<[1], [1], [0], [0], [0, 0, 1, 0], [], []>} : vector<8x8xbf16>, vector<8x8xbf16>, vector<8x8xf32> -> vector<8x8xf32>
    %cst_21 = arith.constant 0.353553385 : f32
    %52 = vector.broadcast %cst_21 : f32 to vector<8x8xf32>
    %53 = arith.mulf %51, %52 : vector<8x8xf32>
    %54 = vector.broadcast %7 : vector<1x8xf32> to vector<8x8xf32>
    %55 = arith.addf %53, %54 : vector<8x8xf32>
    %cst_22 = arith.constant dense<0xFF800000> : vector<8xf32>
    %56 = vector.multi_reduction <maximumf>, %55, %cst_22 [1] : vector<8x8xf32> to vector<8xf32>
    %57 = vector.shape_cast %56 : vector<8xf32> to vector<8x1xf32>
    %58 = vector.broadcast %57 : vector<8x1xf32> to vector<8x8xf32>
    %59 = arith.subf %55, %58 : vector<8x8xf32>
    %60 = math.exp %59 : vector<8x8xf32>
    %cst_23 = arith.constant dense<0.000000e+00> : vector<8xf32>
    %61 = vector.multi_reduction <add>, %60, %cst_23 [1] : vector<8x8xf32> to vector<8xf32>
    %62 = vector.shape_cast %61 : vector<8xf32> to vector<8x1xf32>
    %63 = tpu.reciprocal %62 {approx = true} : vector<8x1xf32> -> vector<8x1xf32>
    %64 = vector.broadcast %63 : vector<8x1xf32> to vector<8x8xf32>
    %65 = arith.mulf %60, %64 : vector<8x8xf32>
    %66 = arith.truncf %65 : vector<8x8xf32> to vector<8x8xbf16>
    %cst_24 = arith.constant dense<0.000000e+00> : vector<8x8xf32>
    %67 = tpu.matmul %66, %50, %cst_24 {dimension_numbers = #tpu.dot_dimension_numbers<[1], [0], [0], [1], [0, 0, 1, 1], [], []>} : vector<8x8xbf16>, vector<8x8xbf16>, vector<8x8xf32> -> vector<8x8xf32>
    %68 = vector.extract_strided_slice %1 {offsets = [0, 24], sizes = [8, 8], strides = [1, 1]} : vector<8x32xbf16> to vector<8x8xbf16>
    %69 = vector.extract_strided_slice %3 {offsets = [0, 24], sizes = [8, 8], strides = [1, 1]} : vector<8x32xbf16> to vector<8x8xbf16>
    %70 = vector.extract_strided_slice %5 {offsets = [0, 24], sizes = [8, 8], strides = [1, 1]} : vector<8x32xbf16> to vector<8x8xbf16>
    %cst_25 = arith.constant dense<0.000000e+00> : vector<8x8xf32>
    %71 = tpu.matmul %68, %69, %cst_25 {dimension_numbers = #tpu.dot_dimension_numbers<[1], [1], [0], [0], [0, 0, 1, 0], [], []>} : vector<8x8xbf16>, vector<8x8xbf16>, vector<8x8xf32> -> vector<8x8xf32>
    %cst_26 = arith.constant 0.353553385 : f32
    %72 = vector.broadcast %cst_26 : f32 to vector<8x8xf32>
    %73 = arith.mulf %71, %72 : vector<8x8xf32>
    %74 = vector.broadcast %7 : vector<1x8xf32> to vector<8x8xf32>
    %75 = arith.addf %73, %74 : vector<8x8xf32>
    %cst_27 = arith.constant dense<0xFF800000> : vector<8xf32>
    %76 = vector.multi_reduction <maximumf>, %75, %cst_27 [1] : vector<8x8xf32> to vector<8xf32>
    %77 = vector.shape_cast %76 : vector<8xf32> to vector<8x1xf32>
    %78 = vector.broadcast %77 : vector<8x1xf32> to vector<8x8xf32>
    %79 = arith.subf %75, %78 : vector<8x8xf32>
    %80 = math.exp %79 : vector<8x8xf32>
    %cst_28 = arith.constant dense<0.000000e+00> : vector<8xf32>
    %81 = vector.multi_reduction <add>, %80, %cst_28 [1] : vector<8x8xf32> to vector<8xf32>
    %82 = vector.shape_cast %81 : vector<8xf32> to vector<8x1xf32>
    %83 = tpu.reciprocal %82 {approx = true} : vector<8x1xf32> -> vector<8x1xf32>
    %84 = vector.broadcast %83 : vector<8x1xf32> to vector<8x8xf32>
    %85 = arith.mulf %80, %84 : vector<8x8xf32>
    %86 = arith.truncf %85 : vector<8x8xf32> to vector<8x8xbf16>
    %cst_29 = arith.constant dense<0.000000e+00> : vector<8x8xf32>
    %87 = tpu.matmul %86, %70, %cst_29 {dimension_numbers = #tpu.dot_dimension_numbers<[1], [0], [0], [1], [0, 0, 1, 1], [], []>} : vector<8x8xbf16>, vector<8x8xbf16>, vector<8x8xf32> -> vector<8x8xf32>
    %88 = tpu.concatenate %27, %47, %67, %87 in 1 : vector<8x8xf32>, vector<8x8xf32>, vector<8x8xf32>, vector<8x8xf32> -> vector<8x32xf32>
    %89 = arith.truncf %88 : vector<8x32xf32> to vector<8x32xbf16>
    %c0_30 = arith.constant 0 : index
    %c0_31 = arith.constant 0 : index
    %c0_32 = arith.constant 0 : index
    %90 = vector.load %arg5[%c0_30, %c0_31, %c0_32] : memref<1x8x32xbf16, #tpu.memory_space<vmem>>, vector<1x8x32xbf16>
    %91 = vector.shape_cast %90 : vector<1x8x32xbf16> to vector<8x32xbf16>
    %92 = vector.shape_cast %89 : vector<8x32xbf16> to vector<1x8x32xbf16>
    tpu.vector_store %arg5[%c0_30, %c0_31, %c0_32], %92 {strides = array<i32>} : memref<1x8x32xbf16, #tpu.memory_space<vmem>>, vector<1x8x32xbf16>,
    return
  }
  func.func @transform_0(%arg0: i32) -> (i32, i32, i32) {
    %c0_i32 = arith.constant 0 : i32
    %c0_i32_0 = arith.constant 0 : i32
    %c0_i32_1 = arith.constant 0 : i32
    return %arg0, %c0_i32, %c0_i32_0 : i32, i32, i32
  }
  func.func @transform_1(%arg0: i32) -> (i32, i32, i32) {
    %c0_i32 = arith.constant 0 : i32
    %c0_i32_0 = arith.constant 0 : i32
    %c0_i32_1 = arith.constant 0 : i32
    return %arg0, %c0_i32, %c0_i32_0 : i32, i32, i32
  }
  func.func @transform_2(%arg0: i32) -> (i32, i32, i32) {
    %c0_i32 = arith.constant 0 : i32
    %c0_i32_0 = arith.constant 0 : i32
    %c0_i32_1 = arith.constant 0 : i32
    return %arg0, %c0_i32, %c0_i32_0 : i32, i32, i32
  }
  func.func @transform_3(%arg0: i32) -> (i32, i32, i32) {
    %c0_i32 = arith.constant 0 : i32
    %c0_i32_0 = arith.constant 0 : i32
    %c0_i32_1 = arith.constant 0 : i32
    return %arg0, %c0_i32, %c0_i32_0 : i32, i32, i32
  }
  func.func @transform_4(%arg0: i32) -> (i32, i32, i32) {
    %c0_i32 = arith.constant 0 : i32
    %c0_i32_0 = arith.constant 0 : i32
    %c0_i32_1 = arith.constant 0 : i32
    return %arg0, %c0_i32, %c0_i32_0 : i32, i32, i32
  }
}

module attributes {stable_mosaic.version = 11 : i64} {
  func.func @_qkv_kernel(%arg0: i32, %arg1: memref<16x32xbf16, #tpu.memory_space<vmem>>, %arg2: memref<32x32xbf16, #tpu.memory_space<vmem>>, %arg3: memref<32x32xbf16, #tpu.memory_space<vmem>>, %arg4: memref<32x32xbf16, #tpu.memory_space<vmem>>, %arg5: memref<1x32xf32, #tpu.memory_space<vmem>>, %arg6: memref<1x32xf32, #tpu.memory_space<vmem>>, %arg7: memref<1x32xf32, #tpu.memory_space<vmem>>, %arg8: memref<16x32xbf16, #tpu.memory_space<vmem>>, %arg9: memref<16x32xbf16, #tpu.memory_space<vmem>>, %arg10: memref<16x32xbf16, #tpu.memory_space<vmem>>) attributes {dimension_semantics = [#tpu.dimension_semantics<parallel>], iteration_bounds = array<i64: 1>, scalar_prefetch = 0 : i64, scratch_operands = 0 : i64, tpu.core_type = #tpu.core_type<tc>, window_params = [{transform_indices = @transform_0, window_bounds = array<i64: 16, 32>}, {pipeline_mode = #tpu.pipeline_mode<synchronous>, transform_indices = @transform_1, window_bounds = array<i64: 32, 32>}, {pipeline_mode = #tpu.pipeline_mode<synchronous>, transform_indices = @transform_2, window_bounds = array<i64: 32, 32>}, {pipeline_mode = #tpu.pipeline_mode<synchronous>, transform_indices = @transform_3, window_bounds = array<i64: 32, 32>}, {pipeline_mode = #tpu.pipeline_mode<synchronous>, transform_indices = @transform_4, window_bounds = array<i64: 1, 32>}, {pipeline_mode = #tpu.pipeline_mode<synchronous>, transform_indices = @transform_5, window_bounds = array<i64: 1, 32>}, {pipeline_mode = #tpu.pipeline_mode<synchronous>, transform_indices = @transform_6, window_bounds = array<i64: 1, 32>}, {transform_indices = @transform_7, window_bounds = array<i64: 16, 32>}, {transform_indices = @transform_8, window_bounds = array<i64: 16, 32>}, {transform_indices = @transform_9, window_bounds = array<i64: 16, 32>}]} {
    %c0 = arith.constant 0 : index
    %c0_0 = arith.constant 0 : index
    %0 = vector.load %arg1[%c0, %c0_0] : memref<16x32xbf16, #tpu.memory_space<vmem>>, vector<16x32xbf16>
    %c0_1 = arith.constant 0 : index
    %c0_2 = arith.constant 0 : index
    %1 = vector.load %arg2[%c0_1, %c0_2] : memref<32x32xbf16, #tpu.memory_space<vmem>>, vector<32x32xbf16>
    %cst = arith.constant dense<0.000000e+00> : vector<16x32xf32>
    %2 = tpu.matmul %0, %1, %cst {dimension_numbers = #tpu.dot_dimension_numbers<[1], [0], [0], [1], [0, 0, 1, 1], [], []>} : vector<16x32xbf16>, vector<32x32xbf16>, vector<16x32xf32> -> vector<16x32xf32>
    %c0_3 = arith.constant 0 : index
    %c0_4 = arith.constant 0 : index
    %3 = vector.load %arg5[%c0_3, %c0_4] : memref<1x32xf32, #tpu.memory_space<vmem>>, vector<1x32xf32>
    %4 = vector.broadcast %3 : vector<1x32xf32> to vector<16x32xf32>
    %5 = arith.addf %2, %4 : vector<16x32xf32>
    %6 = arith.truncf %5 : vector<16x32xf32> to vector<16x32xbf16>
    %c0_5 = arith.constant 0 : index
    %c0_6 = arith.constant 0 : index
    %7 = vector.load %arg8[%c0_5, %c0_6] : memref<16x32xbf16, #tpu.memory_space<vmem>>, vector<16x32xbf16>
    tpu.vector_store %arg8[%c0_5, %c0_6], %6 {strides = array<i32>} : memref<16x32xbf16, #tpu.memory_space<vmem>>, vector<16x32xbf16>,
    %c0_7 = arith.constant 0 : index
    %c0_8 = arith.constant 0 : index
    %8 = vector.load %arg3[%c0_7, %c0_8] : memref<32x32xbf16, #tpu.memory_space<vmem>>, vector<32x32xbf16>
    %cst_9 = arith.constant dense<0.000000e+00> : vector<16x32xf32>
    %9 = tpu.matmul %0, %8, %cst_9 {dimension_numbers = #tpu.dot_dimension_numbers<[1], [0], [0], [1], [0, 0, 1, 1], [], []>} : vector<16x32xbf16>, vector<32x32xbf16>, vector<16x32xf32> -> vector<16x32xf32>
    %c0_10 = arith.constant 0 : index
    %c0_11 = arith.constant 0 : index
    %10 = vector.load %arg6[%c0_10, %c0_11] : memref<1x32xf32, #tpu.memory_space<vmem>>, vector<1x32xf32>
    %11 = vector.broadcast %10 : vector<1x32xf32> to vector<16x32xf32>
    %12 = arith.addf %9, %11 : vector<16x32xf32>
    %13 = arith.truncf %12 : vector<16x32xf32> to vector<16x32xbf16>
    %c0_12 = arith.constant 0 : index
    %c0_13 = arith.constant 0 : index
    %14 = vector.load %arg9[%c0_12, %c0_13] : memref<16x32xbf16, #tpu.memory_space<vmem>>, vector<16x32xbf16>
    tpu.vector_store %arg9[%c0_12, %c0_13], %13 {strides = array<i32>} : memref<16x32xbf16, #tpu.memory_space<vmem>>, vector<16x32xbf16>,
    %c0_14 = arith.constant 0 : index
    %c0_15 = arith.constant 0 : index
    %15 = vector.load %arg4[%c0_14, %c0_15] : memref<32x32xbf16, #tpu.memory_space<vmem>>, vector<32x32xbf16>
    %cst_16 = arith.constant dense<0.000000e+00> : vector<16x32xf32>
    %16 = tpu.matmul %0, %15, %cst_16 {dimension_numbers = #tpu.dot_dimension_numbers<[1], [0], [0], [1], [0, 0, 1, 1], [], []>} : vector<16x32xbf16>, vector<32x32xbf16>, vector<16x32xf32> -> vector<16x32xf32>
    %c0_17 = arith.constant 0 : index
    %c0_18 = arith.constant 0 : index
    %17 = vector.load %arg7[%c0_17, %c0_18] : memref<1x32xf32, #tpu.memory_space<vmem>>, vector<1x32xf32>
    %18 = vector.broadcast %17 : vector<1x32xf32> to vector<16x32xf32>
    %19 = arith.addf %16, %18 : vector<16x32xf32>
    %20 = arith.truncf %19 : vector<16x32xf32> to vector<16x32xbf16>
    %c0_19 = arith.constant 0 : index
    %c0_20 = arith.constant 0 : index
    %21 = vector.load %arg10[%c0_19, %c0_20] : memref<16x32xbf16, #tpu.memory_space<vmem>>, vector<16x32xbf16>
    tpu.vector_store %arg10[%c0_19, %c0_20], %20 {strides = array<i32>} : memref<16x32xbf16, #tpu.memory_space<vmem>>, vector<16x32xbf16>,
    return
  }
  func.func @transform_0(%arg0: i32) -> (i32, i32) {
    %c0_i32 = arith.constant 0 : i32
    %c0_i32_0 = arith.constant 0 : i32
    return %arg0, %c0_i32 : i32, i32
  }
  func.func @transform_1(%arg0: i32) -> (i32, i32) {
    %c0_i32 = arith.constant 0 : i32
    %c0_i32_0 = arith.constant 0 : i32
    %c0_i32_1 = arith.constant 0 : i32
    return %c0_i32, %c0_i32_0 : i32, i32
  }
  func.func @transform_2(%arg0: i32) -> (i32, i32) {
    %c0_i32 = arith.constant 0 : i32
    %c0_i32_0 = arith.constant 0 : i32
    %c0_i32_1 = arith.constant 0 : i32
    return %c0_i32, %c0_i32_0 : i32, i32
  }
  func.func @transform_3(%arg0: i32) -> (i32, i32) {
    %c0_i32 = arith.constant 0 : i32
    %c0_i32_0 = arith.constant 0 : i32
    %c0_i32_1 = arith.constant 0 : i32
    return %c0_i32, %c0_i32_0 : i32, i32
  }
  func.func @transform_4(%arg0: i32) -> (i32, i32) {
    %c0_i32 = arith.constant 0 : i32
    %c0_i32_0 = arith.constant 0 : i32
    %c0_i32_1 = arith.constant 0 : i32
    return %c0_i32, %c0_i32_0 : i32, i32
  }
  func.func @transform_5(%arg0: i32) -> (i32, i32) {
    %c0_i32 = arith.constant 0 : i32
    %c0_i32_0 = arith.constant 0 : i32
    %c0_i32_1 = arith.constant 0 : i32
    return %c0_i32, %c0_i32_0 : i32, i32
  }
  func.func @transform_6(%arg0: i32) -> (i32, i32) {
    %c0_i32 = arith.constant 0 : i32
    %c0_i32_0 = arith.constant 0 : i32
    %c0_i32_1 = arith.constant 0 : i32
    return %c0_i32, %c0_i32_0 : i32, i32
  }
  func.func @transform_7(%arg0: i32) -> (i32, i32) {
    %c0_i32 = arith.constant 0 : i32
    %c0_i32_0 = arith.constant 0 : i32
    return %arg0, %c0_i32 : i32, i32
  }
  func.func @transform_8(%arg0: i32) -> (i32, i32) {
    %c0_i32 = arith.constant 0 : i32
    %c0_i32_0 = arith.constant 0 : i32
    return %arg0, %c0_i32 : i32, i32
  }
  func.func @transform_9(%arg0: i32) -> (i32, i32) {
    %c0_i32 = arith.constant 0 : i32
    %c0_i32_0 = arith.constant 0 : i32
    return %arg0, %c0_i32 : i32, i32
  }
}

module attributes {stable_mosaic.version = 11 : i64} {
  func.func @_ffn_kernel(%arg0: i32, %arg1: memref<16x32xbf16, #tpu.memory_space<vmem>>, %arg2: memref<32x64xbf16, #tpu.memory_space<vmem>>, %arg3: memref<1x64xf32, #tpu.memory_space<vmem>>, %arg4: memref<64x32xbf16, #tpu.memory_space<vmem>>, %arg5: memref<1x32xf32, #tpu.memory_space<vmem>>, %arg6: memref<1x32xf32, #tpu.memory_space<vmem>>, %arg7: memref<1x32xf32, #tpu.memory_space<vmem>>, %arg8: memref<16x32xbf16, #tpu.memory_space<vmem>>) attributes {dimension_semantics = [#tpu.dimension_semantics<parallel>], iteration_bounds = array<i64: 1>, scalar_prefetch = 0 : i64, scratch_operands = 0 : i64, tpu.core_type = #tpu.core_type<tc>, window_params = [{transform_indices = @transform_0, window_bounds = array<i64: 16, 32>}, {pipeline_mode = #tpu.pipeline_mode<synchronous>, transform_indices = @transform_1, window_bounds = array<i64: 32, 64>}, {pipeline_mode = #tpu.pipeline_mode<synchronous>, transform_indices = @transform_2, window_bounds = array<i64: 1, 64>}, {pipeline_mode = #tpu.pipeline_mode<synchronous>, transform_indices = @transform_3, window_bounds = array<i64: 64, 32>}, {pipeline_mode = #tpu.pipeline_mode<synchronous>, transform_indices = @transform_4, window_bounds = array<i64: 1, 32>}, {pipeline_mode = #tpu.pipeline_mode<synchronous>, transform_indices = @transform_5, window_bounds = array<i64: 1, 32>}, {pipeline_mode = #tpu.pipeline_mode<synchronous>, transform_indices = @transform_6, window_bounds = array<i64: 1, 32>}, {transform_indices = @transform_7, window_bounds = array<i64: 16, 32>}]} {
    %c0 = arith.constant 0 : index
    %c0_0 = arith.constant 0 : index
    %0 = vector.load %arg1[%c0, %c0_0] : memref<16x32xbf16, #tpu.memory_space<vmem>>, vector<16x32xbf16>
    %c0_1 = arith.constant 0 : index
    %c0_2 = arith.constant 0 : index
    %1 = vector.load %arg2[%c0_1, %c0_2] : memref<32x64xbf16, #tpu.memory_space<vmem>>, vector<32x64xbf16>
    %cst = arith.constant dense<0.000000e+00> : vector<16x64xf32>
    %2 = tpu.matmul %0, %1, %cst {dimension_numbers = #tpu.dot_dimension_numbers<[1], [0], [0], [1], [0, 0, 1, 1], [], []>} : vector<16x32xbf16>, vector<32x64xbf16>, vector<16x64xf32> -> vector<16x64xf32>
    %c0_3 = arith.constant 0 : index
    %c0_4 = arith.constant 0 : index
    %3 = vector.load %arg3[%c0_3, %c0_4] : memref<1x64xf32, #tpu.memory_space<vmem>>, vector<1x64xf32>
    %4 = vector.broadcast %3 : vector<1x64xf32> to vector<16x64xf32>
    %5 = arith.addf %2, %4 : vector<16x64xf32>
    %cst_5 = arith.constant 5.000000e-01 : f32
    %6 = vector.broadcast %cst_5 : f32 to vector<16x64xf32>
    %7 = arith.mulf %6, %5 : vector<16x64xf32>
    %cst_6 = arith.constant 4.471500e-02 : f32
    %8 = vector.broadcast %cst_6 : f32 to vector<16x64xf32>
    %9 = arith.mulf %8, %5 : vector<16x64xf32>
    %10 = arith.mulf %9, %5 : vector<16x64xf32>
    %11 = arith.mulf %10, %5 : vector<16x64xf32>
    %12 = arith.addf %5, %11 : vector<16x64xf32>
    %cst_7 = arith.constant 0.797884583 : f32
    %13 = vector.broadcast %cst_7 : f32 to vector<16x64xf32>
    %14 = arith.mulf %13, %12 : vector<16x64xf32>
    %15 = math.tanh %14 : vector<16x64xf32>
    %cst_8 = arith.constant 1.000000e+00 : f32
    %16 = vector.broadcast %cst_8 : f32 to vector<16x64xf32>
    %17 = arith.addf %16, %15 : vector<16x64xf32>
    %18 = arith.mulf %7, %17 : vector<16x64xf32>
    %19 = arith.truncf %18 : vector<16x64xf32> to vector<16x64xbf16>
    %c0_9 = arith.constant 0 : index
    %c0_10 = arith.constant 0 : index
    %20 = vector.load %arg4[%c0_9, %c0_10] : memref<64x32xbf16, #tpu.memory_space<vmem>>, vector<64x32xbf16>
    %cst_11 = arith.constant dense<0.000000e+00> : vector<16x32xf32>
    %21 = tpu.matmul %19, %20, %cst_11 {dimension_numbers = #tpu.dot_dimension_numbers<[1], [0], [0], [1], [0, 0, 1, 1], [], []>} : vector<16x64xbf16>, vector<64x32xbf16>, vector<16x32xf32> -> vector<16x32xf32>
    %c0_12 = arith.constant 0 : index
    %c0_13 = arith.constant 0 : index
    %22 = vector.load %arg5[%c0_12, %c0_13] : memref<1x32xf32, #tpu.memory_space<vmem>>, vector<1x32xf32>
    %23 = vector.broadcast %22 : vector<1x32xf32> to vector<16x32xf32>
    %24 = arith.addf %21, %23 : vector<16x32xf32>
    %25 = arith.extf %0 : vector<16x32xbf16> to vector<16x32xf32>
    %26 = arith.addf %24, %25 : vector<16x32xf32>
    %cst_14 = arith.constant dense<0.000000e+00> : vector<16xf32>
    %27 = vector.multi_reduction <add>, %26, %cst_14 [1] : vector<16x32xf32> to vector<16xf32>
    %28 = vector.shape_cast %27 : vector<16xf32> to vector<16x1xf32>
    %cst_15 = arith.constant 3.200000e+01 : f32
    %29 = vector.broadcast %cst_15 : f32 to vector<16x1xf32>
    %30 = arith.divf %28, %29 : vector<16x1xf32>
    %31 = arith.mulf %26, %26 : vector<16x32xf32>
    %cst_16 = arith.constant dense<0.000000e+00> : vector<16xf32>
    %32 = vector.multi_reduction <add>, %31, %cst_16 [1] : vector<16x32xf32> to vector<16xf32>
    %33 = vector.shape_cast %32 : vector<16xf32> to vector<16x1xf32>
    %cst_17 = arith.constant 3.200000e+01 : f32
    %34 = vector.broadcast %cst_17 : f32 to vector<16x1xf32>
    %35 = arith.divf %33, %34 : vector<16x1xf32>
    %36 = arith.mulf %30, %30 : vector<16x1xf32>
    %37 = arith.subf %35, %36 : vector<16x1xf32>
    %cst_18 = arith.constant 0.000000e+00 : f32
    %38 = vector.broadcast %cst_18 : f32 to vector<16x1xf32>
    %39 = arith.maximumf %37, %38 : vector<16x1xf32>
    %40 = vector.broadcast %30 : vector<16x1xf32> to vector<16x32xf32>
    %41 = arith.subf %26, %40 : vector<16x32xf32>
    %cst_19 = arith.constant 9.99999996E-13 : f32
    %42 = vector.broadcast %cst_19 : f32 to vector<16x1xf32>
    %43 = arith.addf %39, %42 : vector<16x1xf32>
    %44 = math.rsqrt %43 : vector<16x1xf32>
    %45 = vector.broadcast %44 : vector<16x1xf32> to vector<16x32xf32>
    %46 = arith.mulf %41, %45 : vector<16x32xf32>
    %c0_20 = arith.constant 0 : index
    %c0_21 = arith.constant 0 : index
    %47 = vector.load %arg6[%c0_20, %c0_21] : memref<1x32xf32, #tpu.memory_space<vmem>>, vector<1x32xf32>
    %48 = vector.broadcast %47 : vector<1x32xf32> to vector<16x32xf32>
    %49 = arith.mulf %46, %48 : vector<16x32xf32>
    %c0_22 = arith.constant 0 : index
    %c0_23 = arith.constant 0 : index
    %50 = vector.load %arg7[%c0_22, %c0_23] : memref<1x32xf32, #tpu.memory_space<vmem>>, vector<1x32xf32>
    %51 = vector.broadcast %50 : vector<1x32xf32> to vector<16x32xf32>
    %52 = arith.addf %49, %51 : vector<16x32xf32>
    %53 = arith.truncf %52 : vector<16x32xf32> to vector<16x32xbf16>
    %c0_24 = arith.constant 0 : index
    %c0_25 = arith.constant 0 : index
    %54 = vector.load %arg8[%c0_24, %c0_25] : memref<16x32xbf16, #tpu.memory_space<vmem>>, vector<16x32xbf16>
    tpu.vector_store %arg8[%c0_24, %c0_25], %53 {strides = array<i32>} : memref<16x32xbf16, #tpu.memory_space<vmem>>, vector<16x32xbf16>,
    return
  }
  func.func @transform_0(%arg0: i32) -> (i32, i32) {
    %c0_i32 = arith.constant 0 : i32
    %c0_i32_0 = arith.constant 0 : i32
    return %arg0, %c0_i32 : i32, i32
  }
  func.func @transform_1(%arg0: i32) -> (i32, i32) {
    %c0_i32 = arith.constant 0 : i32
    %c0_i32_0 = arith.constant 0 : i32
    %c0_i32_1 = arith.constant 0 : i32
    return %c0_i32, %c0_i32_0 : i32, i32
  }
  func.func @transform_2(%arg0: i32) -> (i32, i32) {
    %c0_i32 = arith.constant 0 : i32
    %c0_i32_0 = arith.constant 0 : i32
    %c0_i32_1 = arith.constant 0 : i32
    return %c0_i32, %c0_i32_0 : i32, i32
  }
  func.func @transform_3(%arg0: i32) -> (i32, i32) {
    %c0_i32 = arith.constant 0 : i32
    %c0_i32_0 = arith.constant 0 : i32
    %c0_i32_1 = arith.constant 0 : i32
    return %c0_i32, %c0_i32_0 : i32, i32
  }
  func.func @transform_4(%arg0: i32) -> (i32, i32) {
    %c0_i32 = arith.constant 0 : i32
    %c0_i32_0 = arith.constant 0 : i32
    %c0_i32_1 = arith.constant 0 : i32
    return %c0_i32, %c0_i32_0 : i32, i32
  }
  func.func @transform_5(%arg0: i32) -> (i32, i32) {
    %c0_i32 = arith.constant 0 : i32
    %c0_i32_0 = arith.constant 0 : i32
    %c0_i32_1 = arith.constant 0 : i32
    return %c0_i32, %c0_i32_0 : i32, i32
  }
  func.func @transform_6(%arg0: i32) -> (i32, i32) {
    %c0_i32 = arith.constant 0 : i32
    %c0_i32_0 = arith.constant 0 : i32
    %c0_i32_1 = arith.constant 0 : i32
    return %c0_i32, %c0_i32_0 : i32, i32
  }
  func.func @transform_7(%arg0: i32) -> (i32, i32) {
    %c0_i32 = arith.constant 0 : i32
    %c0_i32_0 = arith.constant 0 : i32
    return %arg0, %c0_i32 : i32, i32
  }
}

module attributes {stable_mosaic.version = 11 : i64} {
  func.func @_classifier_loss_kernel(%arg0: i32, %arg1: memref<16x32xbf16, #tpu.memory_space<vmem>>, %arg2: memref<32x128xbf16, #tpu.memory_space<vmem>>, %arg3: memref<1x128xf32, #tpu.memory_space<vmem>>, %arg4: memref<16x1xi32, #tpu.memory_space<vmem>>, %arg5: memref<16x1xf32, #tpu.memory_space<vmem>>, %arg6: memref<16x128xf32, #tpu.memory_space<vmem>>, %arg7: memref<1x128xf32, #tpu.memory_space<vmem>>) attributes {dimension_semantics = [#tpu.dimension_semantics<arbitrary>], iteration_bounds = array<i64: 1>, scalar_prefetch = 0 : i64, scratch_operands = 0 : i64, tpu.core_type = #tpu.core_type<tc>, window_params = [{transform_indices = @transform_0, window_bounds = array<i64: 16, 32>}, {pipeline_mode = #tpu.pipeline_mode<synchronous>, transform_indices = @transform_1, window_bounds = array<i64: 32, 128>}, {pipeline_mode = #tpu.pipeline_mode<synchronous>, transform_indices = @transform_2, window_bounds = array<i64: 1, 128>}, {transform_indices = @transform_3, window_bounds = array<i64: 16, 1>}, {transform_indices = @transform_4, window_bounds = array<i64: 16, 1>}, {transform_indices = @transform_5, window_bounds = array<i64: 16, 128>}, {pipeline_mode = #tpu.pipeline_mode<synchronous>, transform_indices = @transform_6, window_bounds = array<i64: 1, 128>}]} {
    %c0 = arith.constant 0 : index
    %c0_0 = arith.constant 0 : index
    %0 = vector.load %arg1[%c0, %c0_0] : memref<16x32xbf16, #tpu.memory_space<vmem>>, vector<16x32xbf16>
    %c0_1 = arith.constant 0 : index
    %c0_2 = arith.constant 0 : index
    %1 = vector.load %arg2[%c0_1, %c0_2] : memref<32x128xbf16, #tpu.memory_space<vmem>>, vector<32x128xbf16>
    %cst = arith.constant dense<0.000000e+00> : vector<16x128xf32>
    %2 = tpu.matmul %0, %1, %cst {dimension_numbers = #tpu.dot_dimension_numbers<[1], [0], [0], [1], [0, 0, 1, 1], [], []>} : vector<16x32xbf16>, vector<32x128xbf16>, vector<16x128xf32> -> vector<16x128xf32>
    %c0_3 = arith.constant 0 : index
    %c0_4 = arith.constant 0 : index
    %3 = vector.load %arg3[%c0_3, %c0_4] : memref<1x128xf32, #tpu.memory_space<vmem>>, vector<1x128xf32>
    %4 = vector.broadcast %3 : vector<1x128xf32> to vector<16x128xf32>
    %5 = arith.addf %2, %4 : vector<16x128xf32>
    %c0_5 = arith.constant 0 : index
    %c0_6 = arith.constant 0 : index
    %6 = vector.load %arg6[%c0_5, %c0_6] : memref<16x128xf32, #tpu.memory_space<vmem>>, vector<16x128xf32>
    tpu.vector_store %arg6[%c0_5, %c0_6], %5 {strides = array<i32>} : memref<16x128xf32, #tpu.memory_space<vmem>>, vector<16x128xf32>,
    %cst_7 = arith.constant dense<0xFF800000> : vector<16xf32>
    %7 = vector.multi_reduction <maximumf>, %5, %cst_7 [1] : vector<16x128xf32> to vector<16xf32>
    %8 = vector.shape_cast %7 : vector<16xf32> to vector<16x1xf32>
    %9 = vector.broadcast %8 : vector<16x1xf32> to vector<16x128xf32>
    %10 = arith.subf %5, %9 : vector<16x128xf32>
    %11 = math.exp %10 : vector<16x128xf32>
    %cst_8 = arith.constant dense<0.000000e+00> : vector<16xf32>
    %12 = vector.multi_reduction <add>, %11, %cst_8 [1] : vector<16x128xf32> to vector<16xf32>
    %13 = vector.shape_cast %12 : vector<16xf32> to vector<16x1xf32>
    %14 = math.log %13 : vector<16x1xf32>
    %15 = arith.addf %8, %14 : vector<16x1xf32>
    %16 = tpu.iota {dimensions = array<i32: 1>} : vector<16x128xi32>
    %c0_9 = arith.constant 0 : index
    %c0_10 = arith.constant 0 : index
    %17 = vector.load %arg4[%c0_9, %c0_10] : memref<16x1xi32, #tpu.memory_space<vmem>>, vector<16x1xi32>
    %18 = vector.broadcast %17 : vector<16x1xi32> to vector<16x128xi32>
    %19 = arith.cmpi eq, %16, %18 : vector<16x128xi32>
    %cst_11 = arith.constant 0.000000e+00 : f32
    %20 = vector.broadcast %cst_11 : f32 to vector<16x128xf32>
    %21 = arith.select %19, %5, %20 : vector<16x128xi1>, vector<16x128xf32>
    %cst_12 = arith.constant dense<0.000000e+00> : vector<16xf32>
    %22 = vector.multi_reduction <add>, %21, %cst_12 [1] : vector<16x128xf32> to vector<16xf32>
    %23 = vector.shape_cast %22 : vector<16xf32> to vector<16x1xf32>
    %c0_13 = arith.constant 0 : index
    %c0_14 = arith.constant 0 : index
    %24 = vector.load %arg5[%c0_13, %c0_14] : memref<16x1xf32, #tpu.memory_space<vmem>>, vector<16x1xf32>
    %25 = arith.subf %15, %23 : vector<16x1xf32>
    %26 = arith.mulf %25, %24 : vector<16x1xf32>
    %27 = vector.shape_cast %26 : vector<16x1xf32> to vector<1x16x1xf32>
    %cst_15 = arith.constant dense<0.000000e+00> : vector<1xf32>
    %28 = vector.multi_reduction <add>, %27, %cst_15 [1, 2] : vector<1x16x1xf32> to vector<1xf32>
    %29 = vector.shape_cast %28 : vector<1xf32> to vector<1x1x1xf32>
    %30 = vector.extract %29[0, 0, 0] : f32 from vector<1x1x1xf32>
    %31 = vector.shape_cast %24 : vector<16x1xf32> to vector<1x16x1xf32>
    %cst_16 = arith.constant dense<0.000000e+00> : vector<1xf32>
    %32 = vector.multi_reduction <add>, %31, %cst_16 [1, 2] : vector<1x16x1xf32> to vector<1xf32>
    %33 = vector.shape_cast %32 : vector<1xf32> to vector<1x1x1xf32>
    %34 = vector.extract %33[0, 0, 0] : f32 from vector<1x1x1xf32>
    %35 = tpu.iota {dimensions = array<i32: 1>} : vector<1x128xi32>
    %c0_i32 = arith.constant 0 : i32
    %36 = vector.broadcast %c0_i32 : i32 to vector<1x128xi32>
    %37 = arith.cmpi eq, %35, %36 : vector<1x128xi32>
    %c1_i32 = arith.constant 1 : i32
    %38 = vector.broadcast %c1_i32 : i32 to vector<1x128xi32>
    %39 = arith.cmpi eq, %35, %38 : vector<1x128xi32>
    %cst_17 = arith.constant 0.000000e+00 : f32
    %40 = vector.broadcast %34 : f32 to vector<1x128xf32>
    %41 = vector.broadcast %cst_17 : f32 to vector<1x128xf32>
    %42 = arith.select %39, %40, %41 : vector<1x128xi1>, vector<1x128xf32>
    %43 = vector.broadcast %30 : f32 to vector<1x128xf32>
    %44 = arith.select %37, %43, %42 : vector<1x128xi1>, vector<1x128xf32>
    %c0_i32_18 = arith.constant 0 : i32
    %45 = arith.cmpi eq, %arg0, %c0_i32_18 : i32
    %46 = arith.extui %45 : i1 to i32
    %c0_i32_19 = arith.constant 0 : i32
    %47 = arith.cmpi ne, %46, %c0_i32_19 : i32
    scf.if %47 {
      %cst_24 = arith.constant 0.000000e+00 : f32
      %51 = vector.broadcast %cst_24 : f32 to vector<1x128xf32>
      %c0_25 = arith.constant 0 : index
      %c0_26 = arith.constant 0 : index
      %52 = vector.load %arg7[%c0_25, %c0_26] : memref<1x128xf32, #tpu.memory_space<vmem>>, vector<1x128xf32>
      tpu.vector_store %arg7[%c0_25, %c0_26], %51 {strides = array<i32>} : memref<1x128xf32, #tpu.memory_space<vmem>>, vector<1x128xf32>,
    } else {
    }
    %c0_20 = arith.constant 0 : index
    %c0_21 = arith.constant 0 : index
    %48 = vector.load %arg7[%c0_20, %c0_21] : memref<1x128xf32, #tpu.memory_space<vmem>>, vector<1x128xf32>
    %49 = arith.addf %48, %44 : vector<1x128xf32>
    %c0_22 = arith.constant 0 : index
    %c0_23 = arith.constant 0 : index
    %50 = vector.load %arg7[%c0_22, %c0_23] : memref<1x128xf32, #tpu.memory_space<vmem>>, vector<1x128xf32>
    tpu.vector_store %arg7[%c0_22, %c0_23], %49 {strides = array<i32>} : memref<1x128xf32, #tpu.memory_space<vmem>>, vector<1x128xf32>,
    return
  }
  func.func @transform_0(%arg0: i32) -> (i32, i32) {
    %c0_i32 = arith.constant 0 : i32
    %c0_i32_0 = arith.constant 0 : i32
    return %arg0, %c0_i32 : i32, i32
  }
  func.func @transform_1(%arg0: i32) -> (i32, i32) {
    %c0_i32 = arith.constant 0 : i32
    %c0_i32_0 = arith.constant 0 : i32
    %c0_i32_1 = arith.constant 0 : i32
    return %c0_i32, %c0_i32_0 : i32, i32
  }
  func.func @transform_2(%arg0: i32) -> (i32, i32) {
    %c0_i32 = arith.constant 0 : i32
    %c0_i32_0 = arith.constant 0 : i32
    %c0_i32_1 = arith.constant 0 : i32
    return %c0_i32, %c0_i32_0 : i32, i32
  }
  func.func @transform_3(%arg0: i32) -> (i32, i32) {
    %c0_i32 = arith.constant 0 : i32
    %c0_i32_0 = arith.constant 0 : i32
    return %arg0, %c0_i32 : i32, i32
  }
  func.func @transform_4(%arg0: i32) -> (i32, i32) {
    %c0_i32 = arith.constant 0 : i32
    %c0_i32_0 = arith.constant 0 : i32
    return %arg0, %c0_i32 : i32, i32
  }
  func.func @transform_5(%arg0: i32) -> (i32, i32) {
    %c0_i32 = arith.constant 0 : i32
    %c0_i32_0 = arith.constant 0 : i32
    return %arg0, %c0_i32 : i32, i32
  }
  func.func @transform_6(%arg0: i32) -> (i32, i32) {
    %c0_i32 = arith.constant 0 : i32
    %c0_i32_0 = arith.constant 0 : i32
    %c0_i32_1 = arith.constant 0 : i32
    return %c0_i32, %c0_i32_0 : i32, i32
  }
}

</mosaic_0001>

<bundles_post_ra>
// kernel: tpu_custom_call.1
= control target key start
LH: loop header
LB: loop body
LE: loop exit
PB: predicated region body
PF: predicated region fallthrough
CT: control target
= control target key end

     0   :  { %6 = vsyncpa [#allocation3], 0  ;;  %s448_s0 = inlined_call_operand.hbm [shape: f32[8,128], index: 0, kind: input, shape index: {}]   ;;  %s449_s1 = inlined_call_operand.hbm [shape: f32[16,128], index: 1, kind: output, shape index: {}]  }
   0x1   :  { %7 = vsyncpa [#allocation4], 0 }
   0x2   :  { %9 = vsyncpa [#allocation4 + $0x1], 0  ;;  %s348_s6 = smov 0   ;;  %s350_s7 = smov 0  }
   0x3   :  { %s352_s8 = smov 0   ;;  %s354_s9 = smov 0  }
   0x4 LB: > { %s369_s10 = sadd.s32 4294967295, %s334_s9   ;;  %s184_s11 = sadd.s32 4294967294, %s334_s9   ;;  %s334_s9 = sphi %s354_s9, %s457_s9   ;;  %s330_s8 = sphi %s352_s8, %s456_s8   ;;  %s326_s7 = sphi %s350_s7, %s455_s7   ;;  %s322_s6 = sphi %s348_s6, %s454_s6  }
   0x5   : > { %s373_s12 = sadd.s32 1, %s334_s9   ;;  %s43_s13 = sadd.s32 1, %s330_s8 }
   0x6   : > { %s40_s14 = ssub.s32 %s334_s9, %s373_s12  ;;  %p53_p0 = scmp.ne.s32.totalorder %s330_s8, %s326_s7 }
   0x7   : > { %p41_p1 = scmp.eq.s32.totalorder %s40_s14, 0  ;;  %p54_p2 = scmp.eq.s32.totalorder %s369_s10, 1 }
   0x8   : > { %p59_p3 = scmp.ne.s32.totalorder %s326_s7, %s322_s6  ;;  %p60_p4 = scmp.eq.s32.totalorder %s184_s11, 1 }
   0x9   : > { %s384_s15 = scalar_select %p41_p1, %s330_s8, %s43_s13  }
   0xa   : > { %p386_p5 = por %p54_p2, %p53_p0  ;;  %p390_p6 = por %p60_p4, %p59_p3 }
   0xb   : > { %p185_p7 = scmp.ge.s32.totalorder %s334_s9, 1  ;;  %p67_p8 = scmp.lt.s32.totalorder %s334_s9, 3 }
   0xc   : > { %s451_s17 = scalar_select %p390_p6, 1, 0 }
   0xd   : > { %p208_p9 = scmp.eq.s32.totalorder %s369_s10, 0  ;;  %p397_p10 = pnand %p185_p7, %p67_p8 }
   0xe   : > { %s336_s19 = smov [#allocation2]  }
   0xf   : > { %s80_s20 = sshll.u32 %s336_s19, 4  ;;  %p200_p11 = pneg %p397_p10  ;;  %s81_s20 = int_to_ptr.vmem [resolvable:$true] %s80_s20 }
  0x10   : > { %s255_s21 = scalar_lea.vmem %s81_s20, 128  ;;  %p263_p3 = scmp.lt.s32.totalorder %s81_s20, %s81_s20 }
  0x11   : > { %p201_p12 = pnand %p208_p9, %p200_p11  ;;  %p256_p0 = scmp.ne.s32.totalorder %s81_s20, %s255_s21 }
  0x12   : > { %p264_p4 = scmp.lt.s32.totalorder %s255_s21, %s255_s21 }
  0x13   : > { %p246_p13 = pneg %p201_p12 }
  0x14   : > { %p265_p6 = por %p264_p4, %p263_p3 }
  0x15   : > { %p258_p1 = pnand %p256_p0, %p246_p13 }
  0x17   : > { %p259_p2 = pneg %p258_p1 }
  0x19   : > { %p266_p7 = pnand %p265_p6, %p259_p2 }
  0x1b   : > { %269 = shalt.err (!%p266_p7)
}
  0x1c   : > { %203 = dma.hbm_to_vmem [thread:$0]  (!%p201_p12), %s448_s0, 128, %s81_s20, [#allocation3]  }
  0x1d   : > { %93 = sbr.rel (%p397_p10) target bundleno = 60 (0x3c), region = 24 }
  0x22   : > { %313 = dma.done.wait (%p208_p9), [#allocation3], 128  }
  0x23   : > { %315 = vsyncadd (%p208_p9), [#allocation3], 4294967168  ;;  %s105_s24 = sand.u32 1, %s326_s7   ;;  %s191_s28 = sshll.u32 %s369_s10, 7  ;;  %v108_v0 = vld [vmem:[#allocation2] sm:$0xff] }
  0x24   : > { %s189_s25 = sshll.u32 %s105_s24, 3  ;;  %v109_v1 = vadd.f32 1.0, %v108_v0  ;;  %s123_s2 = scalar_lea.hbm %s449_s1, %s191_s28 }
  0x25   : > { %s107_s26 = scalar_lea.vmem [#allocation5], %s189_s25  ;;  %s112_s3 = scalar_lea.sflag [#allocation4], %s105_s24 }
  0x26   : > { %s125_s27 = sshll.u32 %s107_s26, 4  ;;  %110 = vst [vmem:[%s107_s26] sm:$0xff] %v109_v1  ;;  %s337_s5 = smov [#allocation5]   ;;  %s126_s27 = int_to_ptr.vmem [resolvable:$true] %s125_s27 }
  0x27   : > { %s270_s4 = scalar_lea.vmem %s126_s27, 128  ;;  %s274_s11 = sshll.u32 %s337_s5, 4  ;;  %s275_s11 = int_to_ptr.vmem [resolvable:$false] %s274_s11 }
  0x28   : > { %p271_p6 = scmp.ne.s32.totalorder %s126_s27, %s270_s4  ;;  %s276_s13 = scalar_lea.vmem %s275_s11, 256 }
  0x29   : > { %p277_p10 = scmp.lt.s32.totalorder %s126_s27, %s275_s11  ;;  %p278_p11 = scmp.lt.s32.totalorder %s276_s13, %s270_s4 }
  0x2a   : > { %p272_p8 = pnand %p271_p6, %p386_p5 }
  0x2b   : > { %p279_p12 = por %p278_p11, %p277_p10 }
  0x2c   : > { %p273_p9 = pneg %p272_p8 }
  0x2e   : > { %p280_p13 = pnand %p279_p12, %p273_p9 }
  0x30   : > { %283 = shalt.err (!%p280_p13)
}
  0x31   : > { %s284_s10 = scalar_lea.hbm %s123_s2, 128  ;;  %s288_s19 = scalar_lea.hbm %s449_s1, 256 }
  0x32   : > { %p285_p0 = scmp.ne.s32.totalorder %s123_s2, %s284_s10  ;;  %p289_p3 = scmp.lt.s32.totalorder %s123_s2, %s449_s1 }
  0x33   : > { %p290_p4 = scmp.lt.s32.totalorder %s288_s19, %s284_s10 }
  0x34   : > { %p286_p1 = pnand %p285_p0, %p386_p5 }
  0x35   : > { %p291_p7 = por %p290_p4, %p289_p3 }
  0x36   : > { %p287_p2 = pneg %p286_p1 }
  0x38   : > { %p292_p6 = pnand %p291_p7, %p287_p2 }
  0x3a   : > { %295 = shalt.err (!%p292_p6)
}
  0x3b   : > { %198 = dma.vmem_to_hbm [thread:$0]  (%p386_p5), %s126_s27, 128, %s123_s2, %s112_s3  }
  0x3c PF: > { %p210_p8 = scmp.ge.s32.totalorder %s334_s9, 2  ;;  %s137_s22 = sand.u32 1, %s322_s6  }
  0x3d   : > { %p453_p9 = scmp.ne.s32.totalorder %s451_s17, 0  ;;  %s138_s23 = scalar_lea.sflag [#allocation4], %s137_s22 }
  0x3f   : > { %p205_p10 = pnand %p210_p8, %p453_p9 }
  0x41   : > { %p206_p11 = pneg %p205_p10 }
  0x43   : > { %317 = dma.done.wait (%p206_p11), %s138_s23, 128  }
  0x44   : > { %319 = vsyncadd (%p206_p11), %s138_s23, 4294967168  ;;  %p12_p12 = scmp.ge.s32.totalorder %s373_s12, 4   ;;  %s454_s6 = smov %s326_s7 }
  0x45   : > { %s455_s7 = smov %s330_s8  ;;  %s456_s8 = smov %s384_s15 }
  0x46   : > { %s457_s9 = smov %s373_s12  ;;  %14 = sbr.rel (!%p12_p12) target bundleno = 4 (0x4), region = 61 }
  0x4b   :  { %143 = vsyncpa [#allocation3], 1 }
  0x4c   :  { %145 = vsyncpa [#allocation3 + $0x1], 1 }
  0x4d   :  { %146 = vsyncpa [#allocation4], 1 }
  0x4e   :  { %148 = vsyncpa [#allocation4 + $0x1], 1 }

// kernel: bert_encoder_ranker_forward.13
= control target key start
LH: loop header
LB: loop body
LE: loop exit
PB: predicated region body
PF: predicated region fallthrough
CT: control target
= control target key end

     0   :  { %v206_v0 = vmov 0.0   ;;  %vm207_vm0 = vmmov 0   ;;  %vm54_vm1 = vcmask 261120   ;;  %vm164_vm2 = vcmask 257024   ;;  %s275_s1 = inlined_call_operand.vmem [shape: bf16[32,32], index: 1, kind: input, shape index: {}]   ;;  %s276_s0 = inlined_call_operand.vmem [shape: bf16[16,32], index: 0, kind: input, shape index: {}]   ;;  %s277_s3 = inlined_call_operand.vmem [shape: bf16[16,32], index: 3, kind: input, shape index: {}]   ;;  %s278_s2 = inlined_call_operand.vmem [shape: f32[1,32], index: 2, kind: input, shape index: {}]   ;;  %s279_s4 = inlined_call_operand.vmem [shape: f32[1,32], index: 4, kind: input, shape index: {}]   ;;  %s280_s5 = inlined_call_operand.vmem [shape: f32[1,32], index: 5, kind: input, shape index: {}]   ;;  %s281_s6 = inlined_call_operand.vmem [shape: bf16[16,32], index: 6, kind: output, shape index: {}]  }
   0x1   :  { %189 = vmatprep.subr.bf16.mxu0 %v206_v0  ;;  %v199_v1 = vld [vmem:[%s275_s1 + $0x8] sm:$0xff]   ;;  %193 = vmatprep.mubr.msk.bf16.mxu0 %vm207_vm0, %v206_v0  ;;  %v200_v2 = vld [vmem:[%s275_s1] sm:$0xff]  }
   0x2   :  { %190 = vmatpush3.bf16.msra.mxu0 %v199_v1  ;;  %v201_v3 = vld [vmem:[%s276_s0] sm:$0xff]  }
   0x3   :  { %191 = vmatprep.subr.bf16.mxu0 %v206_v0  ;;  %v183_v4 = vld [vmem:[%s277_s3] sm:$0xff]  }
   0x4   :  { %v171_v5 = vld [vmem:[%s278_s2] ss:$0 sm:$0xff]  ;;  %v184_v6 = vunpack.c.l.bf16 %v183_v4  ;;  %v185_v11 = vunpack.c.h.bf16 %v183_v4 }
   0x5   :  { %v176_v40 = vld [vmem:[%s279_s4] ss:$0 sm:$0xff] }
   0x6   :  { %192 = vmatpush3.bf16.msra.mxu0 %v200_v2  ;;  %v177_v42 = vld [vmem:[%s280_s5] ss:$0 sm:$0xff] }
   0x9   :  { %194 = vmatmul.mubr.msk.bf16.vlgmr.msra.gmra.mxu0 %vm54_vm1, %v201_v3 }
  0xc9   :  { %v92_v7 = vpop.f32.mrf.mxu0 }
  0xca   :  { %v93_v8 = vadd.f32 %v171_v5, %v92_v7 }
  0xcb   :  { %v195_v9 = vpop.f32.mrf.mxu0 }
  0xcc   :  { %v103_v10 = vadd.f32 %v184_v6, %v93_v8 }
  0xcd   :  { %v95_v12 = vpop.f32.mrf.mxu0 }
  0xce   :  { %v96_v13 = vadd.f32 %v171_v5, %v95_v12  ;;  %v105_v14 = vsel %vm54_vm1, %v103_v10, 0.0  ;;  %v114_v15 = vmul.f32 %v103_v10, %v103_v10 }
  0xcf   :  { %106 = vadd.xlane.f32.xlu0 %v105_v14  ;;  %v196_v16 = vpop.f32.mrf.mxu0 }
  0xd0   :  { %v104_v17 = vadd.f32 %v185_v11, %v96_v13  ;;  %v116_v18 = vsel %vm54_vm1, %v114_v15, 0.0 }
  0xd1   :  { %117 = vadd.xlane.f32.xlu1 %v116_v18 }
  0xd2   :  { %v108_v19 = vsel %vm54_vm1, %v104_v17, 0.0  ;;  %v115_v20 = vmul.f32 %v104_v17, %v104_v17 }
  0xd3   :  { %109 = vadd.xlane.f32.xlu0 %v108_v19 }
  0xd4   :  { %v119_v21 = vsel %vm54_vm1, %v115_v20, 0.0 }
  0xd5   :  { %120 = vadd.xlane.f32.xlu1 %v119_v21 }
 0x158   :  { %v107_v22 = vpop.xlane.xlu0 %106 }
 0x159   :  { %v112_v23 = vmul.f32 0.03125, %v107_v22 }
 0x15a   :  { %v118_v24 = vpop.xlane.xlu1 %117 }
 0x15b   :  { %v124_v25 = vmul.f32 %v112_v23, %v112_v23  ;;  %v122_v26 = vmul.f32 0.03125, %v118_v24  ;;  %v130_v38 = vsub.f32 %v103_v10, %v112_v23 }
 0x15c   :  { %v110_v27 = vpop.xlane.xlu0 %109 }
 0x15d   :  { %v126_v28 = vsub.f32 %v122_v26, %v124_v25  ;;  %v113_v29 = vmul.f32 0.03125, %v110_v27 }
 0x15e   :  { %v121_v30 = vpop.xlane.xlu1 %120 }
 0x15f   :  { %v128_v31 = vmax.f32 %v126_v28, 0.0  ;;  %v125_v32 = vmul.f32 %v113_v29, %v113_v29  ;;  %v123_v33 = vmul.f32 0.03125, %v121_v30  ;;  %v131_v44 = vsub.f32 %v104_v17, %v113_v29 }
 0x161   :  { %v132_v34 = vadd.f32 1e-12, %v128_v31  ;;  %v127_v35 = vsub.f32 %v123_v33, %v125_v32 }
 0x163   :  { %202 = vrsqrt.f32 %v132_v34  ;;  %v129_v36 = vmax.f32 %v127_v35, 0.0 }
 0x165   :  { %v133_v37 = vadd.f32 1e-12, %v129_v36 }
 0x167   :  { %204 = vrsqrt.f32 %v133_v37 }
 0x170   :  { %v203_v39 = vpop.eup %202 }
 0x171   :  { %v136_v41 = vmul.f32 %v203_v39, %v130_v38 }
 0x173   :  { %v145_v43 = vmul.f32 %v176_v40, %v136_v41 }
 0x174   :  { %v205_v45 = vpop.eup %204 }
 0x175   :  { %v154_v46 = vadd.f32 %v177_v42, %v145_v43  ;;  %v137_v47 = vmul.f32 %v205_v45, %v131_v44 }
 0x177   :  { %v180_v48 = vpack.c.bf16 %v154_v46, %v154_v46  ;;  %v146_v49 = vmul.f32 %v176_v40, %v137_v47 }
 0x179   :  { %165 = vst.msk [vmem:[%s281_s6] sm:$0xf] %vm164_vm2, %v180_v48  ;;  %v155_v50 = vadd.f32 %v177_v42, %v146_v49 }
 0x17b   :  { %v181_v51 = vpack.c.bf16 %v155_v50, %v155_v50 }
 0x17d   :  { %166 = vst.msk [vmem:[%s281_s6 + $0x4] sm:$0xf] %vm164_vm2, %v181_v51 }

// kernel: bert_encoder_ranker_forward.10
= control target key start
LH: loop header
LB: loop body
LE: loop exit
PB: predicated region body
PF: predicated region fallthrough
CT: control target
= control target key end

     0   :  { %vm16_vm0 = vcmask 261120   ;;  %vm76_vm1 = vcmask 257024   ;;  %s131_s0 = inlined_call_operand.vmem [shape: f32[16,32], index: 0, kind: input, shape index: {}]   ;;  %s132_s1 = inlined_call_operand.vmem [shape: f32[1,32], index: 1, kind: input, shape index: {}]   ;;  %s133_s2 = inlined_call_operand.vmem [shape: f32[1,32], index: 2, kind: input, shape index: {}]   ;;  %s134_s3 = inlined_call_operand.vmem [shape: bf16[16,32], index: 3, kind: output, shape index: {}]  }
   0x1   :  { %v14_v0 = vld [vmem:[%s131_s0] sm:$0xff]  ;;  %v15_v1 = vld [vmem:[%s131_s0 + $0x8] sm:$0xff] }
   0x2   :  { %v17_v2 = vsel %vm16_vm0, %v14_v0, 0.0  ;;  %v26_v3 = vmul.f32 %v14_v0, %v14_v0  ;;  %v27_v4 = vmul.f32 %v15_v1, %v15_v1  ;;  %v20_v6 = vsel %vm16_vm0, %v15_v1, 0.0  ;;  %v83_v26 = vld [vmem:[%s132_s1] ss:$0 sm:$0xff] }
   0x3   :  { %18 = vadd.xlane.f32.xlu0 %v17_v2  ;;  %v84_v28 = vld [vmem:[%s133_s2] ss:$0 sm:$0xff] }
   0x4   :  { %v28_v5 = vsel %vm16_vm0, %v26_v3, 0.0  ;;  %v31_v7 = vsel %vm16_vm0, %v27_v4, 0.0 }
   0x5   :  { %29 = vadd.xlane.f32.xlu1 %v28_v5 }
   0x7   :  { %21 = vadd.xlane.f32.xlu0 %v20_v6 }
   0x9   :  { %32 = vadd.xlane.f32.xlu1 %v31_v7 }
  0x8c   :  { %v19_v8 = vpop.xlane.xlu0 %18 }
  0x8d   :  { %v24_v9 = vmul.f32 0.03125, %v19_v8 }
  0x8e   :  { %v30_v10 = vpop.xlane.xlu1 %29 }
  0x8f   :  { %v36_v11 = vmul.f32 %v24_v9, %v24_v9  ;;  %v34_v12 = vmul.f32 0.03125, %v30_v10  ;;  %v42_v24 = vsub.f32 %v14_v0, %v24_v9 }
  0x90   :  { %v22_v13 = vpop.xlane.xlu0 %21 }
  0x91   :  { %v38_v14 = vsub.f32 %v34_v12, %v36_v11  ;;  %v25_v15 = vmul.f32 0.03125, %v22_v13 }
  0x92   :  { %v33_v16 = vpop.xlane.xlu1 %32 }
  0x93   :  { %v40_v17 = vmax.f32 %v38_v14, 0.0  ;;  %v37_v18 = vmul.f32 %v25_v15, %v25_v15  ;;  %v35_v19 = vmul.f32 0.03125, %v33_v16  ;;  %v43_v30 = vsub.f32 %v15_v1, %v25_v15 }
  0x95   :  { %v44_v20 = vadd.f32 1e-12, %v40_v17  ;;  %v39_v21 = vsub.f32 %v35_v19, %v37_v18 }
  0x97   :  { %89 = vrsqrt.f32 %v44_v20  ;;  %v41_v22 = vmax.f32 %v39_v21, 0.0 }
  0x99   :  { %v45_v23 = vadd.f32 1e-12, %v41_v22 }
  0x9b   :  { %91 = vrsqrt.f32 %v45_v23 }
  0xa4   :  { %v90_v25 = vpop.eup %89 }
  0xa5   :  { %v48_v27 = vmul.f32 %v90_v25, %v42_v24 }
  0xa7   :  { %v57_v29 = vmul.f32 %v83_v26, %v48_v27 }
  0xa8   :  { %v92_v31 = vpop.eup %91 }
  0xa9   :  { %v66_v32 = vadd.f32 %v84_v28, %v57_v29  ;;  %v49_v33 = vmul.f32 %v92_v31, %v43_v30 }
  0xab   :  { %v87_v34 = vpack.c.bf16 %v66_v32, %v66_v32  ;;  %v58_v35 = vmul.f32 %v83_v26, %v49_v33 }
  0xad   :  { %77 = vst.msk [vmem:[%s134_s3] sm:$0xf] %vm76_vm1, %v87_v34  ;;  %v67_v36 = vadd.f32 %v84_v28, %v58_v35 }
  0xaf   :  { %v88_v37 = vpack.c.bf16 %v67_v36, %v67_v36 }
  0xb1   :  { %78 = vst.msk [vmem:[%s134_s3 + $0x4] sm:$0xf] %vm76_vm1, %v88_v37 }

// kernel: bert_encoder_ranker_forward.11
= control target key start
LH: loop header
LB: loop body
LE: loop exit
PB: predicated region body
PF: predicated region fallthrough
CT: control target
= control target key end

     0   :  { %v343_v0 = vmov 0.0   ;;  %vm344_vm0 = vmmov 0   ;;  %vm60_vm1 = vcmask 261120   ;;  %vm113_vm2 = vcmask 257024   ;;  %s452_s1 = inlined_call_operand.vmem [shape: bf16[32,32], index: 1, kind: input, shape index: {}]   ;;  %s453_s2 = inlined_call_operand.vmem [shape: bf16[32,32], index: 2, kind: input, shape index: {}]   ;;  %s454_s0 = inlined_call_operand.vmem [shape: bf16[16,32], index: 0, kind: input, shape index: {}]   ;;  %s455_s3 = inlined_call_operand.vmem [shape: bf16[32,32], index: 3, kind: input, shape index: {}]   ;;  %s456_s4 = inlined_call_operand.vmem [shape: f32[1,32], index: 4, kind: input, shape index: {}]   ;;  %s457_s5 = inlined_call_operand.vmem [shape: f32[1,32], index: 5, kind: input, shape index: {}]   ;;  %s458_s7 = inlined_call_operand.vmem [shape: bf16[16,32], index: 7, kind: output, shape index: {0}]   ;;  %s459_s8 = inlined_call_operand.vmem [shape: bf16[16,32], index: 8, kind: output, shape index: {1}]   ;;  %s460_s6 = inlined_call_operand.vmem [shape: f32[1,32], index: 6, kind: input, shape index: {}]   ;;  %s461_s9 = inlined_call_operand.vmem [shape: bf16[16,32], index: 9, kind: output, shape index: {2}]  }
   0x1   :  { %310 = vmatprep.subr.bf16.mxu0 %v343_v0  ;;  %v336_v1 = vld [vmem:[%s452_s1 + $0x8] sm:$0xff]   ;;  %318 = vmatprep.subr.bf16.mxu1 %v343_v0  ;;  %v338_v3 = vld [vmem:[%s452_s1] sm:$0xff]  }
   0x2   :  { %v337_v2 = vld [vmem:[%s453_s2 + $0x8] sm:$0xff]   ;;  %314 = vmatprep.mubr.msk.bf16.mxu0 %vm344_vm0, %v343_v0  ;;  %322 = vmatprep.mubr.msk.bf16.mxu1 %vm344_vm0, %v343_v0  ;;  %v340_v4 = vld [vmem:[%s453_s2] sm:$0xff]  }
   0x3   :  { %311 = vmatpush3.bf16.msra.mxu0 %v336_v1  ;;  %319 = vmatpush3.bf16.msra.mxu1 %v337_v2  ;;  %v339_v5 = vld [vmem:[%s454_s0] sm:$0xff]   ;;  %v341_v6 = vld [vmem:[%s455_s3 + $0x8] sm:$0xff]  }
   0x4   :  { %312 = vmatprep.subr.bf16.mxu0 %v343_v0  ;;  %320 = vmatprep.subr.bf16.mxu1 %v343_v0  ;;  %v342_v7 = vld [vmem:[%s455_s3] sm:$0xff]  }
   0x5   :  { %v276_v8 = vld [vmem:[%s456_s4] ss:$0 sm:$0xff] }
   0x6   :  { %v283_v9 = vld [vmem:[%s457_s5] ss:$0 sm:$0xff] }
   0x7   :  { %313 = vmatpush3.bf16.msra.mxu0 %v338_v3  ;;  %321 = vmatpush3.bf16.msra.mxu1 %v340_v4  ;;  %v289_v23 = vld [vmem:[%s460_s6] ss:$0 sm:$0xff] }
   0x8   :  { %326 = vmatprep.subr.bf16.mxu0 %v343_v0 }
   0xa   :  { %315 = vmatmul.mubr.msk.bf16.vlgmr.msra.gmra.mxu0 %vm60_vm1, %v339_v5  ;;  %323 = vmatmul.mubr.msk.bf16.vlgmr.msra.gmra.mxu1 %vm60_vm1, %v339_v5 }
   0xb   :  { %327 = vmatpush3.bf16.msra.mxu0 %v341_v6  ;;  %330 = vmatprep.mubr.msk.bf16.mxu0 %vm344_vm0, %v343_v0 }
   0xc   :  { %328 = vmatprep.subr.bf16.mxu0 %v343_v0 }
   0xf   :  { %329 = vmatpush3.bf16.msra.mxu0 %v342_v7 }
  0x12   :  { %331 = vmatmul.mubr.msk.bf16.vlgmr.msra.gmra.mxu0 %vm60_vm1, %v339_v5 }
  0xca   :  { %v98_v10 = vpop.f32.mrf.mxu0  ;;  %v173_v12 = vpop.f32.mrf.mxu1 }
  0xcb   :  { %v99_v11 = vadd.f32 %v276_v8, %v98_v10  ;;  %v174_v14 = vadd.f32 %v283_v9, %v173_v12 }
  0xcc   :  { %v316_v13 = vpop.f32.mrf.mxu0  ;;  %v324_v16 = vpop.f32.mrf.mxu1 }
  0xcd   :  { %v295_v15 = vpack.c.bf16 %v99_v11, %v99_v11  ;;  %v297_v17 = vpack.c.bf16 %v174_v14, %v174_v14 }
  0xce   :  { %v101_v18 = vpop.f32.mrf.mxu0  ;;  %v176_v20 = vpop.f32.mrf.mxu1 }
  0xcf   :  { %114 = vst.msk [vmem:[%s458_s7] sm:$0xf] %vm113_vm2, %v295_v15  ;;  %v102_v19 = vadd.f32 %v276_v8, %v101_v18  ;;  %188 = vst.msk [vmem:[%s459_s8] sm:$0xf] %vm113_vm2, %v297_v17  ;;  %v177_v22 = vadd.f32 %v283_v9, %v176_v20 }
  0xd0   :  { %v317_v21 = vpop.f32.mrf.mxu0  ;;  %v325_v25 = vpop.f32.mrf.mxu1 }
  0xd1   :  { %v296_v24 = vpack.c.bf16 %v102_v19, %v102_v19  ;;  %v298_v26 = vpack.c.bf16 %v177_v22, %v177_v22 }
  0xd2   :  { %v247_v27 = vpop.f32.mrf.mxu0 }
  0xd3   :  { %115 = vst.msk [vmem:[%s458_s7 + $0x4] sm:$0xf] %vm113_vm2, %v296_v24  ;;  %v248_v28 = vadd.f32 %v289_v23, %v247_v27  ;;  %189 = vst.msk [vmem:[%s459_s8 + $0x4] sm:$0xf] %vm113_vm2, %v298_v26 }
  0xd4   :  { %v332_v29 = vpop.f32.mrf.mxu0 }
  0xd5   :  { %v299_v30 = vpack.c.bf16 %v248_v28, %v248_v28 }
  0xd6   :  { %v250_v31 = vpop.f32.mrf.mxu0 }
  0xd7   :  { %262 = vst.msk [vmem:[%s461_s9] sm:$0xf] %vm113_vm2, %v299_v30  ;;  %v251_v32 = vadd.f32 %v289_v23, %v250_v31 }
  0xd8   :  { %v333_v33 = vpop.f32.mrf.mxu0 }
  0xd9   :  { %v300_v34 = vpack.c.bf16 %v251_v32, %v251_v32 }
  0xdb   :  { %263 = vst.msk [vmem:[%s461_s9 + $0x4] sm:$0xf] %vm113_vm2, %v300_v34 }

// kernel: bert_encoder_ranker_forward.12
= control target key start
LH: loop header
LB: loop body
LE: loop exit
PB: predicated region body
PF: predicated region fallthrough
CT: control target
= control target key end

     0   :  { %s974_s15 = smov 0   ;;  %s1078_s0 = inlined_call_operand.vmem [shape: bf16[2,8,32], index: 0, kind: input, shape index: {}]   ;;  %s1079_s1 = inlined_call_operand.vmem [shape: bf16[2,8,32], index: 1, kind: input, shape index: {}]   ;;  %s1080_s2 = inlined_call_operand.vmem [shape: bf16[2,8,32], index: 2, kind: input, shape index: {}]   ;;  %s1081_s3 = inlined_call_operand.vmem [shape: f32[2,1,8], index: 3, kind: input, shape index: {}]   ;;  %s1082_s4 = inlined_call_operand.vmem [shape: bf16[2,8,32], index: 4, kind: output, shape index: {}]  }
   0x1 LB: > { %s811_s16 = sadd.s32 4294967295, %s939_s15   ;;  %p815_p0 = scmp.ge.s32.totalorder %s939_s15, 1  ;;  %s939_s15 = sphi %s974_s15, %s14_s15  }
   0x2   : > { %p187_p1 = scmp.lt.s32.totalorder %s939_s15, 3 }
   0x4   : > { %p188_p2 = pnand %p815_p0, %p187_p1 }
   0x5   : > { %p222_p3 = scmp.lt.s32.totalorder (!%p188_p2), %s811_s16, 1  ;;  %s943_s27 = smov (!%p188_p2), 120  }
   0x6   : > { %191 = sbr.rel (%p188_p2) target bundleno = 1418 (0x58a), region = 36  ;;  %s944_s28 = smov (!%p188_p2), 112  }
   0x7   : > { %s945_s29 = smov (!%p188_p2), 104   ;;  %s946_s7 = smov (!%p188_p2), 8  }
   0x8   : > { %s947_s8 = smov (!%p188_p2), 16   ;;  %s948_s9 = smov (!%p188_p2), 24  }
   0xb   : > { %v941_v0 = vmov 0.0   ;;  %vm942_vm0 = vmmov 0   ;;  %s1084_s16 = smov (!%p222_p3, %s811_s16), 1  ;;  %vm246_vm1 = vcmask 64512   ;;  %vm316_vm2 = vcmask 1043456  }
   0xc   : > { %850 = vmatprep.subr.bf16.mxu0 %v941_v0  ;;  %852 = vmatprep.mubr.msk.bf16.mxu0 %vm942_vm0, %v941_v0  ;;  %s988_s17 = sshll.u32 %s1084_s16, 2  ;;  %s236_s26 = scalar_lea.vmem %s1081_s3, %s1084_s16  ;;  %vm718_vm3 = vcmask 130048   ;;  %vm720_vm4 = vcmask 195584   ;;  %vm723_vm5 = vcmask 257024  }
   0xd   : > { %856 = vmatprep.subr.bf16.mxu1 %v941_v0  ;;  %858 = vmatprep.mubr.msk.bf16.mxu1 %vm942_vm0, %v941_v0  ;;  %s229_s20 = scalar_lea.vmem %s1079_s1, %s988_s17  ;;  %s225_s23 = scalar_lea.vmem %s1078_s0, %s988_s17  ;;  %v1006_v5 = vld [vmem:[%s236_s26] ss:$0 sm:$0xff] }
   0xe   : > { %v243_v1 = vld [vmem:[%s229_s20] sm:$0xf]  ;;  %s233_s6 = scalar_lea.vmem %s1080_s2, %s988_s17  ;;  %s240_s12 = scalar_lea.vmem %s1082_s4, %s988_s17 }
   0xf   : > { %v251_v2 = vsel %vm246_vm1, %v243_v1, 0  ;;  %v242_v3 = vld [vmem:[%s225_s23] sm:$0xf]  ;;  %v824_v12 = vcombine.low %v243_v1, %v243_v1 }
  0x10   : > { %851 = vmatpush3.bf16.xpose.msra.mxu0 %v251_v2  ;;  %v823_v13 = vcombine.low %v242_v3, %v242_v3  ;;  %v1020_v19 = vld [vmem:[%s233_s6] sm:$0xf] }
  0x11   : > { %868 = vmatprep.subr.bf16.mxu0 %v941_v0  ;;  %368 = vrot.lane.b32.xlu1 %v824_v12, %s943_s27  ;;  %v318_v20 = vsel %vm316_vm2, %v1020_v19, 0 }
  0x12   : > { %857 = vmatpush3.bf16.msra.mxu1 %v318_v20 }
  0x13   : > { %862 = vmatprep.subr.bf16.mxu1 %v941_v0 }
  0x15   : > { %363 = vrot.lane.b32.xlu1 %v823_v13, %s943_s27 }
  0x17   : > { %853 = vmatmul.mubr.msk.bf16.vlgmr.msra.gmra.mxu0 %vm246_vm1, %v242_v3 }
  0x18   : > { %870 = vmatprep.mubr.msk.bf16.mxu0 %vm942_vm0, %v941_v0 }
  0x19   : > { %481 = vrot.lane.b32.xlu1 %v823_v13, %s944_s28 }
  0x1d   : > { %595 = vrot.lane.b32.xlu1 %v824_v12, %s945_s29 }
  0x21   : > { %593 = vrot.lane.b32.xlu1 %v823_v13, %s945_s29 }
  0x83   : > { %v369_v23 = vpop.permute.xlu1 %368 }
  0x84   : > { %v374_v25 = vsel %vm246_vm1, %v369_v23, 0 }
  0x87   : > { %v364_v27 = vpop.permute.xlu1 %363 }
  0x8b   : > { %v482_v29 = vpop.permute.xlu1 %481 }
  0x8f   : > { %v596_v31 = vpop.permute.xlu1 %595 }
  0x90   : > { %v601_v32 = vsel %vm246_vm1, %v596_v31, 0 }
  0x93   : > { %v594_v33 = vpop.permute.xlu1 %593 }
  0xd7   : > { %v287_v4 = vpop.f32.mrf.mxu0 }
  0xd8   : > { %v293_v6 = vmul.f32 0.35355338, %v287_v4 }
  0xd9   : > { %v854_v7 = vpop.f32.mrf.mxu0 }
  0xda   : > { %v300_v8 = vadd.f32 %v1006_v5, %v293_v6  ;;  %v826_v6 = vcombine.low %v1020_v19, %v1020_v19 }
  0xdb   : > { %v290_v9 = vpop.f32.mrf.mxu0 }
  0xdc   : > { %v301_v10 = vsel %vm246_vm1, %v300_v8, -inf }
  0xdd   : > { %302 = vmax.xlane.f32.xlu0 %v301_v10  ;;  %v855_v11 = vpop.f32.mrf.mxu0 }
 0x166   : > { %v303_v14 = vpop.xlane.xlu0 %302 }
 0x167   : > { %v304_v15 = vsub.f32 %v300_v8, %v303_v14 }
 0x169   : > { %v305_v16 = vmul.f32 1.442695, %v304_v15 }
 0x16b   : > { %917 = vpow2.f32 %v305_v16 }
 0x178   : > { %v918_v17 = vpop.eup %917 }
 0x179   : > { %v307_v18 = vsel %vm246_vm1, %v918_v17, 0.0 }
 0x17a   : > { %308 = vadd.xlane.f32.xlu0 %v307_v18 }
 0x190   : > { %483 = vrot.lane.b32.xlu0 %v824_v12, %s944_s28 }
 0x203   : > { %v309_v21 = vpop.xlane.xlu0 %308 }
 0x204   : > { %919 = vrcp.f32 %v309_v21 }
 0x207   : > { %v484_v28 = vpop.permute.xlu0 %483 }
 0x208   : > { %v489_v30 = vsel %vm246_vm1, %v484_v28, 0 }
 0x211   : > { %v920_v22 = vpop.eup %919 }
 0x212   : > { %v311_v24 = vmul.f32 %v920_v22, %v918_v17 }
 0x214   : > { %v312_v26 = vpack.c.bf16 %v311_v24, %v311_v24 }
 0x216   : > { %859 = vmatmul.mubr.msk.bf16.vlgmr.msra.gmra.mxu1 %vm246_vm1, %v312_v26 }
 0x217   : > { %863 = vmatpush3.bf16.xpose.msra.mxu1 %v374_v25  ;;  %864 = vmatprep.mubr.msk.bf16.mxu1 %vm942_vm0, %v941_v0 }
 0x218   : > { %874 = vmatprep.subr.bf16.mxu1 %v941_v0 }
 0x21e   : > { %865 = vmatmul.mubr.msk.bf16.vlgmr.msra.gmra.mxu1 %vm246_vm1, %v364_v27 }
 0x21f   : > { %875 = vmatpush3.bf16.xpose.msra.mxu1 %v489_v30  ;;  %876 = vmatprep.mubr.msk.bf16.mxu1 %vm942_vm0, %v941_v0 }
 0x220   : > { %886 = vmatprep.subr.bf16.mxu1 %v941_v0 }
 0x226   : > { %877 = vmatmul.mubr.msk.bf16.vlgmr.msra.gmra.mxu1 %vm246_vm1, %v482_v29 }
 0x227   : > { %887 = vmatpush3.bf16.xpose.msra.mxu1 %v601_v32  ;;  %888 = vmatprep.mubr.msk.bf16.mxu1 %vm942_vm0, %v941_v0 }
 0x22e   : > { %889 = vmatmul.mubr.msk.bf16.vlgmr.msra.gmra.mxu1 %vm246_vm1, %v594_v33 }
 0x2d6   : > { %v1041_v34 = vpop.f32.mrf.mxu1 }
 0x2d8   : > { %v860_v35 = vpop.f32.mrf.mxu1 }
 0x2da   : > { %v357_v36 = vpop.f32.mrf.mxu1 }
 0x2dc   : > { %v861_v37 = vpop.f32.mrf.mxu1 }
 0x2de   : > { %v410_v38 = vpop.f32.mrf.mxu1 }
 0x2df   : > { %v416_v39 = vmul.f32 0.35355338, %v410_v38 }
 0x2e0   : > { %v866_v40 = vpop.f32.mrf.mxu1 }
 0x2e1   : > { %v417_v41 = vadd.f32 %v1006_v5, %v416_v39 }
 0x2e2   : > { %v413_v42 = vpop.f32.mrf.mxu1 }
 0x2e3   : > { %v418_v43 = vsel %vm246_vm1, %v417_v41, -inf }
 0x2e4   : > { %419 = vmax.xlane.f32.xlu1 %v418_v43  ;;  %v867_v44 = vpop.f32.mrf.mxu1 }
 0x2e6   : > { %v525_v45 = vpop.f32.mrf.mxu1 }
 0x2e7   : > { %v531_v46 = vmul.f32 0.35355338, %v525_v45 }
 0x2e8   : > { %v878_v47 = vpop.f32.mrf.mxu1 }
 0x2e9   : > { %v532_v48 = vadd.f32 %v1006_v5, %v531_v46 }
 0x2ea   : > { %v528_v49 = vpop.f32.mrf.mxu1 }
 0x2eb   : > { %v533_v50 = vsel %vm246_vm1, %v532_v48, -inf }
 0x2ec   : > { %534 = vmax.xlane.f32.xlu0 %v533_v50  ;;  %v879_v51 = vpop.f32.mrf.mxu1 }
 0x2ee   : > { %v637_v52 = vpop.f32.mrf.mxu1 }
 0x2ef   : > { %v643_v53 = vmul.f32 0.35355338, %v637_v52 }
 0x2f0   : > { %v890_v54 = vpop.f32.mrf.mxu1 }
 0x2f1   : > { %v644_v55 = vadd.f32 %v1006_v5, %v643_v53 }
 0x2f2   : > { %v640_v56 = vpop.f32.mrf.mxu1 }
 0x2f3   : > { %v645_v57 = vsel %vm246_vm1, %v644_v55, -inf }
 0x2f4   : > { %646 = vmax.xlane.f32.xlu1 %v645_v57  ;;  %v891_v58 = vpop.f32.mrf.mxu1 }
 0x36d   : > { %v420_v59 = vpop.xlane.xlu1 %419 }
 0x36e   : > { %v421_v60 = vsub.f32 %v417_v41, %v420_v59 }
 0x370   : > { %v422_v61 = vmul.f32 1.442695, %v421_v60 }
 0x372   : > { %921 = vpow2.f32 %v422_v61 }
 0x375   : > { %v535_v62 = vpop.xlane.xlu0 %534 }
 0x376   : > { %v536_v63 = vsub.f32 %v532_v48, %v535_v62 }
 0x378   : > { %v537_v1 = vmul.f32 1.442695, %v536_v63 }
 0x37a   : > { %923 = vpow2.f32 %v537_v1 }
 0x37d   : > { %v647_v7 = vpop.xlane.xlu1 %646 }
 0x37e   : > { %v648_v8 = vsub.f32 %v644_v55, %v647_v7 }
 0x37f   : > { %v922_v2 = vpop.eup %921 }
 0x380   : > { %v424_v3 = vsel %vm246_vm1, %v922_v2, 0.0  ;;  %v649_v9 = vmul.f32 1.442695, %v648_v8 }
 0x381   : > { %425 = vadd.xlane.f32.xlu1 %v424_v3 }
 0x382   : > { %925 = vpow2.f32 %v649_v9 }
 0x387   : > { %v924_v4 = vpop.eup %923 }
 0x388   : > { %v539_v5 = vsel %vm246_vm1, %v924_v4, 0.0 }
 0x389   : > { %540 = vadd.xlane.f32.xlu0 %v539_v5 }
 0x38f   : > { %v926_v10 = vpop.eup %925 }
 0x390   : > { %v651_v11 = vsel %vm246_vm1, %v926_v10, 0.0 }
 0x392   : > { %545 = vrot.lane.b32.xlu1 %v826_v6, %s944_s28 }
 0x39f   : > { %433 = vrot.lane.b32.xlu0 %v826_v6, %s943_s27 }
 0x3b6   : > { %652 = vadd.xlane.f32.xlu1 %v651_v11 }
 0x3c7   : > { %657 = vrot.lane.b32.xlu1 %v826_v6, %s945_s29 }
 0x40a   : > { %v426_v12 = vpop.xlane.xlu1 %425 }
 0x40b   : > { %927 = vrcp.f32 %v426_v12 }
 0x40e   : > { %v546_v18 = vpop.permute.xlu1 %545 }
 0x40f   : > { %v551_v20 = vsel %vm316_vm2, %v546_v18, 0 }
 0x412   : > { %v541_v13 = vpop.xlane.xlu0 %540 }
 0x413   : > { %929 = vrcp.f32 %v541_v13 }
 0x416   : > { %v434_v14 = vpop.permute.xlu0 %433 }
 0x417   : > { %v439_v15 = vsel %vm316_vm2, %v434_v14, 0 }
 0x418   : > { %v928_v16 = vpop.eup %927  ;;  %869 = vmatpush3.bf16.msra.mxu0 %v439_v15 }
 0x419   : > { %880 = vmatprep.subr.bf16.mxu0 %v941_v0  ;;  %v428_v17 = vmul.f32 %v928_v16, %v922_v2 }
 0x41b   : > { %v429_v19 = vpack.c.bf16 %v428_v17, %v428_v17 }
 0x41d   : > { %871 = vmatmul.mubr.msk.bf16.vlgmr.msra.gmra.mxu0 %vm246_vm1, %v429_v19 }
 0x41e   : > { %881 = vmatpush3.bf16.msra.mxu0 %v551_v20  ;;  %882 = vmatprep.mubr.msk.bf16.mxu0 %vm942_vm0, %v941_v0 }
 0x41f   : > { %892 = vmatprep.subr.bf16.mxu0 %v941_v0 }
 0x420   : > { %v930_v21 = vpop.eup %929 }
 0x421   : > { %v543_v22 = vmul.f32 %v930_v21, %v924_v4 }
 0x423   : > { %v544_v23 = vpack.c.bf16 %v543_v22, %v543_v22 }
 0x425   : > { %883 = vmatmul.mubr.msk.bf16.vlgmr.msra.gmra.mxu0 %vm246_vm1, %v544_v23 }
 0x426   : > { %894 = vmatprep.mubr.msk.bf16.mxu0 %vm942_vm0, %v941_v0 }
 0x43f   : > { %v653_v24 = vpop.xlane.xlu1 %652 }
 0x440   : > { %931 = vrcp.f32 %v653_v24 }
 0x443   : > { %v658_v25 = vpop.permute.xlu1 %657 }
 0x444   : > { %v663_v26 = vsel %vm316_vm2, %v658_v25, 0 }
 0x445   : > { %893 = vmatpush3.bf16.msra.mxu0 %v663_v26 }
 0x44d   : > { %v932_v27 = vpop.eup %931 }
 0x44e   : > { %v655_v28 = vmul.f32 %v932_v27, %v926_v10 }
 0x450   : > { %v656_v29 = vpack.c.bf16 %v655_v28, %v655_v28 }
 0x452   : > { %895 = vmatmul.mubr.msk.bf16.vlgmr.msra.gmra.mxu0 %vm246_vm1, %v656_v29 }
 0x4dd   : > { %v475_v30 = vpop.f32.mrf.mxu0 }
 0x4de   : > { %706 = vrot.lane.b32.xlu0 %v475_v30, %s946_s7 }
 0x4df   : > { %v872_v31 = vpop.f32.mrf.mxu0 }
 0x4e1   : > { %v478_v32 = vpop.f32.mrf.mxu0 }
 0x4e3   : > { %v873_v33 = vpop.f32.mrf.mxu0 }
 0x4e5   : > { %v587_v35 = vpop.f32.mrf.mxu0 }
 0x4e6   : > { %710 = vrot.lane.b32.xlu1 %v587_v35, %s947_s8 }
 0x4e7   : > { %v884_v0 = vpop.f32.mrf.mxu0 }
 0x4e9   : > { %v590_v36 = vpop.f32.mrf.mxu0 }
 0x4eb   : > { %v885_v37 = vpop.f32.mrf.mxu0 }
 0x512   : > { %v699_v38 = vpop.f32.mrf.mxu0 }
 0x513   : > { %714 = vrot.lane.b32.xlu0 %v699_v38, %s948_s9 }
 0x514   : > { %v896_v39 = vpop.f32.mrf.mxu0 }
 0x516   : > { %v702_v40 = vpop.f32.mrf.mxu0 }
 0x518   : > { %v897_v41 = vpop.f32.mrf.mxu0 }
 0x550   : > { %v707_v42 = vpop.permute.xlu0 %706 }
 0x551   : > { %v717_v44 = vsel %vm246_vm1, %v1041_v34, %v707_v42 }
 0x558   : > { %v711_v43 = vpop.permute.xlu1 %710 }
 0x559   : > { %v719_v45 = vsel %vm718_vm3, %v717_v44, %v711_v43 }
 0x585   : > { %v715_v46 = vpop.permute.xlu0 %714 }
 0x586   : > { %v721_v47 = vsel %vm720_vm4, %v719_v45, %v715_v46 }
 0x587   : > { %v722_v48 = vpack.c.bf16 %v721_v47, %v721_v47 }
 0x589   : > { %724 = vst.msk [vmem:[%s240_s12] sm:$0xf] %vm723_vm5, %v722_v48 }
 0x58a PF: > { %s14_s15 = sadd.s32 1, %s939_s15  }
 0x58b   : > { %p11_p4 = scmp.ge.s32.totalorder %s14_s15, 4  }
 0x58d   :  { %13 = sbr.rel (!%p11_p4) target bundleno = 1 (0x1), region = 75 }

// kernel: bert_encoder_ranker_forward.14
= control target key start
LH: loop header
LB: loop body
LE: loop exit
PB: predicated region body
PF: predicated region fallthrough
CT: control target
= control target key end

     0   :  { %v338_v0 = vmov 0.0   ;;  %vm339_vm0 = vmmov 0   ;;  %vm57_vm1 = vcmask 261120   ;;  %vm160_vm2 = vcmask 523264   ;;  %s429_s1 = inlined_call_operand.vmem [shape: bf16[32,64], index: 1, kind: input, shape index: {}]   ;;  %s430_s0 = inlined_call_operand.vmem [shape: bf16[16,32], index: 0, kind: input, shape index: {}]   ;;  %s431_s3 = inlined_call_operand.vmem [shape: bf16[64,32], index: 3, kind: input, shape index: {}]   ;;  %s432_s2 = inlined_call_operand.vmem [shape: f32[1,64], index: 2, kind: input, shape index: {}]   ;;  %s433_s4 = inlined_call_operand.vmem [shape: f32[1,32], index: 4, kind: input, shape index: {}]   ;;  %s434_s5 = inlined_call_operand.vmem [shape: f32[1,32], index: 5, kind: input, shape index: {}]   ;;  %s435_s6 = inlined_call_operand.vmem [shape: f32[1,32], index: 6, kind: input, shape index: {}]   ;;  %s436_s7 = inlined_call_operand.vmem [shape: bf16[16,32], index: 7, kind: output, shape index: {}]  }
   0x1   :  { %300 = vmatprep.subr.bf16.mxu0 %v338_v0  ;;  %v322_v1 = vld [vmem:[%s429_s1 + $0x8] sm:$0xff]   ;;  %304 = vmatprep.mubr.msk.bf16.mxu0 %vm339_vm0, %v338_v0  ;;  %v323_v2 = vld [vmem:[%s429_s1] sm:$0xff]   ;;  %v325_v4 = vld [vmem:[%s431_s3 + $0x18] sm:$0xff]   ;;  %vm268_vm3 = vcmask 257024  }
   0x2   :  { %308 = vmatprep.subr.bf16.mxu1 %v338_v0  ;;  %316 = vmatprep.mubr.msk.bf16.mxu1 %vm339_vm0, %v338_v0  ;;  %v389_v3 = vld [vmem:[%s430_s0] sm:$0xff]   ;;  %v326_v5 = vld [vmem:[%s431_s3 + $0x10] sm:$0xff]   ;;  %v327_v6 = vld [vmem:[%s431_s3 + $0x8] sm:$0xff]  }
   0x3   :  { %301 = vmatpush3.bf16.msra.mxu0 %v322_v1  ;;  %309 = vmatpush3.bf16.msra.mxu1 %v325_v4  ;;  %v328_v7 = vld [vmem:[%s431_s3] sm:$0xff]   ;;  %v205_v35 = vunpack.c.l.bf16 %v389_v3  ;;  %v206_v40 = vunpack.c.h.bf16 %v389_v3 }
   0x4   :  { %302 = vmatprep.subr.bf16.mxu0 %v338_v0  ;;  %310 = vmatprep.subr.bf16.mxu1 %v338_v0  ;;  %v275_v8 = vld [vmem:[%s432_s2] ss:$0 sm:$0xff] }
   0x5   :  { %v280_v34 = vld [vmem:[%s433_s4] ss:$0 sm:$0xff] }
   0x7   :  { %303 = vmatpush3.bf16.msra.mxu0 %v323_v2  ;;  %311 = vmatpush3.bf16.msra.mxu1 %v326_v5  ;;  %v286_v5 = vld [vmem:[%s434_s5] ss:$0 sm:$0xff] }
   0x8   :  { %312 = vmatprep.subr.bf16.mxu1 %v338_v0 }
   0xa   :  { %305 = vmatmul.mubr.msk.bf16.vlgmr.msra.gmra.mxu0 %vm57_vm1, %v389_v3 }
   0xb   :  { %313 = vmatpush3.bf16.msra.mxu1 %v327_v6 }
   0xc   :  { %314 = vmatprep.subr.bf16.mxu1 %v338_v0 }
   0xf   :  { %315 = vmatpush3.bf16.msra.mxu1 %v328_v7  ;;  %v287_v7 = vld [vmem:[%s435_s6] ss:$0 sm:$0xff] }
  0xca   :  { %v95_v9 = vpop.f32.mrf.mxu0 }
  0xcb   :  { %v96_v10 = vadd.f32 %v275_v8, %v95_v9 }
  0xcc   :  { %v306_v11 = vpop.f32.mrf.mxu0 }
  0xcd   :  { %v104_v12 = vmul.f32 0.044715, %v96_v10  ;;  %v102_v28 = vmul.f32 0.5, %v96_v10 }
  0xce   :  { %v98_v13 = vpop.f32.mrf.mxu0 }
  0xcf   :  { %v106_v14 = vmul.f32 %v104_v12, %v96_v10  ;;  %v99_v15 = vadd.f32 %v275_v8, %v98_v13 }
  0xd0   :  { %v307_v16 = vpop.f32.mrf.mxu0 }
  0xd1   :  { %v108_v17 = vmul.f32 %v106_v14, %v96_v10  ;;  %v105_v18 = vmul.f32 0.044715, %v99_v15  ;;  %v103_v29 = vmul.f32 0.5, %v99_v15 }
  0xd3   :  { %v110_v19 = vadd.f32 %v108_v17, %v96_v10  ;;  %v107_v20 = vmul.f32 %v105_v18, %v99_v15 }
  0xd5   :  { %v112_v21 = vmul.f32 0.7978846, %v110_v19  ;;  %v109_v22 = vmul.f32 %v107_v20, %v99_v15 }
  0xd7   :  { %330 = vtanh.f32 %v112_v21  ;;  %v111_v23 = vadd.f32 %v109_v22, %v99_v15 }
  0xd9   :  { %v113_v24 = vmul.f32 0.7978846, %v111_v23 }
  0xdb   :  { %332 = vtanh.f32 %v113_v24 }
  0xe4   :  { %v331_v25 = vpop.eup %330 }
  0xe5   :  { %v116_v26 = vadd.f32 1.0, %v331_v25 }
  0xe7   :  { %v118_v31 = vmul.f32 %v116_v26, %v102_v28 }
  0xe8   :  { %v333_v27 = vpop.eup %332 }
  0xe9   :  { %v117_v30 = vadd.f32 1.0, %v333_v27 }
  0xeb   :  { %v119_v32 = vmul.f32 %v117_v30, %v103_v29 }
  0xed   :  { %v120_v33 = vpack.c.bf16 %v119_v32, %v118_v31 }
  0xef   :  { %317 = vmatmul.mubr.msk.bf16.vlgmr.msra.gmra.mxu1 %vm160_vm2, %v120_v33 }
 0x1af   :  { %v198_v36 = vpop.f32.mrf.mxu1 }
 0x1b0   :  { %v199_v37 = vadd.f32 %v280_v34, %v198_v36 }
 0x1b1   :  { %v318_v38 = vpop.f32.mrf.mxu1 }
 0x1b2   :  { %v207_v39 = vadd.f32 %v205_v35, %v199_v37 }
 0x1b3   :  { %v201_v41 = vpop.f32.mrf.mxu1 }
 0x1b4   :  { %v202_v42 = vadd.f32 %v280_v34, %v201_v41  ;;  %v209_v43 = vsel %vm57_vm1, %v207_v39, 0.0  ;;  %v218_v44 = vmul.f32 %v207_v39, %v207_v39 }
 0x1b5   :  { %210 = vadd.xlane.f32.xlu0 %v209_v43  ;;  %v319_v45 = vpop.f32.mrf.mxu1 }
 0x1b6   :  { %v208_v46 = vadd.f32 %v206_v40, %v202_v42  ;;  %v220_v47 = vsel %vm57_vm1, %v218_v44, 0.0 }
 0x1b7   :  { %221 = vadd.xlane.f32.xlu1 %v220_v47 }
 0x1b8   :  { %v212_v48 = vsel %vm57_vm1, %v208_v46, 0.0  ;;  %v219_v49 = vmul.f32 %v208_v46, %v208_v46 }
 0x1b9   :  { %213 = vadd.xlane.f32.xlu0 %v212_v48 }
 0x1ba   :  { %v223_v50 = vsel %vm57_vm1, %v219_v49, 0.0 }
 0x1bb   :  { %224 = vadd.xlane.f32.xlu1 %v223_v50 }
 0x23e   :  { %v211_v51 = vpop.xlane.xlu0 %210 }
 0x23f   :  { %v216_v52 = vmul.f32 0.03125, %v211_v51 }
 0x240   :  { %v222_v53 = vpop.xlane.xlu1 %221 }
 0x241   :  { %v228_v54 = vmul.f32 %v216_v52, %v216_v52  ;;  %v226_v55 = vmul.f32 0.03125, %v222_v53  ;;  %v234_v3 = vsub.f32 %v207_v39, %v216_v52 }
 0x242   :  { %v214_v56 = vpop.xlane.xlu0 %213 }
 0x243   :  { %v230_v57 = vsub.f32 %v226_v55, %v228_v54  ;;  %v217_v58 = vmul.f32 0.03125, %v214_v56 }
 0x244   :  { %v225_v59 = vpop.xlane.xlu1 %224 }
 0x245   :  { %v232_v60 = vmax.f32 %v230_v57, 0.0  ;;  %v229_v61 = vmul.f32 %v217_v58, %v217_v58  ;;  %v227_v62 = vmul.f32 0.03125, %v225_v59  ;;  %v235_v9 = vsub.f32 %v208_v46, %v217_v58 }
 0x247   :  { %v236_v63 = vadd.f32 1e-12, %v232_v60  ;;  %v231_v0 = vsub.f32 %v227_v62, %v229_v61 }
 0x249   :  { %334 = vrsqrt.f32 %v236_v63  ;;  %v233_v1 = vmax.f32 %v231_v0, 0.0 }
 0x24b   :  { %v237_v2 = vadd.f32 1e-12, %v233_v1 }
 0x24d   :  { %336 = vrsqrt.f32 %v237_v2 }
 0x256   :  { %v335_v4 = vpop.eup %334 }
 0x257   :  { %v240_v6 = vmul.f32 %v335_v4, %v234_v3 }
 0x259   :  { %v249_v8 = vmul.f32 %v286_v5, %v240_v6 }
 0x25a   :  { %v337_v10 = vpop.eup %336 }
 0x25b   :  { %v258_v11 = vadd.f32 %v287_v7, %v249_v8  ;;  %v241_v12 = vmul.f32 %v337_v10, %v235_v9 }
 0x25d   :  { %v290_v13 = vpack.c.bf16 %v258_v11, %v258_v11  ;;  %v250_v14 = vmul.f32 %v286_v5, %v241_v12 }
 0x25f   :  { %269 = vst.msk [vmem:[%s436_s7] sm:$0xf] %vm268_vm3, %v290_v13  ;;  %v259_v15 = vadd.f32 %v287_v7, %v250_v14 }
 0x261   :  { %v291_v16 = vpack.c.bf16 %v259_v15, %v259_v15 }
 0x263   :  { %270 = vst.msk [vmem:[%s436_s7 + $0x4] sm:$0xf] %vm268_vm3, %v291_v16 }

// kernel: bert_encoder_ranker_forward.19
= control target key start
LH: loop header
LB: loop body
LE: loop exit
PB: predicated region body
PF: predicated region fallthrough
CT: control target
= control target key end

     0   :  { %v227_v0 = vmov 0.0   ;;  %vm228_vm0 = vmmov 0   ;;  %v229_v2 = vmov 0   ;;  %vm53_vm1 = vcmask 261120   ;;  %s314_s1 = inlined_call_operand.vmem [shape: bf16[32,128], index: 1, kind: input, shape index: {}]   ;;  %s315_s3 = inlined_call_operand.vmem [shape: s32[16,1], index: 3, kind: input, shape index: {}]   ;;  %s316_s0 = inlined_call_operand.vmem [shape: bf16[16,32], index: 0, kind: input, shape index: {}]   ;;  %s317_s2 = inlined_call_operand.vmem [shape: f32[1,128], index: 2, kind: input, shape index: {}]   ;;  %s318_s5 = inlined_call_operand.vmem [shape: f32[16,128], index: 5, kind: output, shape index: {0}]   ;;  %s319_s4 = inlined_call_operand.vmem [shape: f32[16,1], index: 4, kind: input, shape index: {}]   ;;  %s320_s6 = inlined_call_operand.vmem [shape: f32[1,128], index: 6, kind: output, shape index: {1}]  }
   0x1   :  { %199 = vmatprep.subr.bf16.mxu0 %v227_v0  ;;  %v216_v1 = vld [vmem:[%s314_s1 + $0x8] sm:$0xff]   ;;  %203 = vmatprep.mubr.msk.bf16.mxu0 %vm228_vm0, %v227_v0  ;;  %v217_v3 = vld [vmem:[%s314_s1] sm:$0xff]   ;;  %v120_v20 = vlaneseq  ;;  %vm144_vm4 = vcmask 7168   ;;  %179 = vst [vmem:[%s320_s6] sm:$0x1] %v227_v0 }
   0x2   :  { %214 = vset.pattern.permute.xlu1 %v229_v2  ;;  %215 = vset.pattern.permute.xlu0 %v229_v2  ;;  %v122_v4 = vld [vmem:[%s315_s3] sm:$0xff]  ;;  %v123_v6 = vld [vmem:[%s315_s3 + $0x8] sm:$0xff] }
   0x3   :  { %200 = vmatpush3.bf16.msra.mxu0 %v216_v1  ;;  %125 = vperm.xlu1 %214, %v122_v4   ;;  %v218_v5 = vld [vmem:[%s316_s0] sm:$0xff]   ;;  %v292_v22 = vand.u32 127, %v120_v20  ;;  %v139_v39 = vld [vmem:[%s319_s4 + $0x8] sm:$0xff] }
   0x4   :  { %201 = vmatprep.subr.bf16.mxu0 %v227_v0  ;;  %v191_v7 = vld [vmem:[%s317_s2] ss:$0 sm:$0xff]  ;;  %v158_v47 = vsel %vm144_vm4, %v139_v39, 0.0 }
   0x5   :  { %v138_v37 = vld [vmem:[%s319_s4] sm:$0xff]  ;;  %vm170_vm5 = vcmp.eq.s32.totalorder %v292_v22, 1  ;;  %vm169_vm6 = vcmp.eq.s32.totalorder %v292_v22, 0 }
   0x6   :  { %v157_v46 = vsel %vm144_vm4, %v138_v37, 0.0 }
   0x7   :  { %202 = vmatpush3.bf16.msra.mxu0 %v217_v3  ;;  %128 = vperm.xlu1 %214, %v123_v6   ;;  %v159_v49 = vadd.f32 %v158_v47, %v157_v46 }
   0x8   :  { %v180_v1 = vld [vmem:[%s320_s6] sm:$0x1] }
   0xa   :  { %204 = vmatmul.mubr.msk.bf16.vlgmr.msra.gmra.mxu0 %vm53_vm1, %v218_v5 }
  0x7e   :  { %v126_v21 = vpop.permute.xlu1 %125 }
  0x7f   :  { %vm130_vm2 = vcmp.eq.s32.totalorder %v292_v22, %v126_v21 }
  0x82   :  { %v129_v24 = vpop.permute.xlu1 %128 }
  0x83   :  { %vm131_vm3 = vcmp.eq.s32.totalorder %v292_v22, %v129_v24 }
  0xca   :  { %v91_v8 = vpop.f32.mrf.mxu0 }
  0xcb   :  { %v92_v9 = vadd.f32 %v191_v7, %v91_v8 }
  0xcc   :  { %v205_v10 = vpop.f32.mrf.mxu0 }
  0xcd   :  { %98 = vst [vmem:[%s318_s5] sm:$0xff] %v92_v9  ;;  %100 = vmax.xlane.f32.xlu0 %v92_v9  ;;  %v132_v26 = vsel %vm130_vm2, %v92_v9, 0.0 }
  0xce   :  { %v94_v11 = vpop.f32.mrf.mxu0 }
  0xcf   :  { %v95_v12 = vadd.f32 %v191_v7, %v94_v11 }
  0xd0   :  { %v206_v13 = vpop.f32.mrf.mxu0 }
  0xd1   :  { %99 = vst [vmem:[%s318_s5 + $0x8] sm:$0xff] %v95_v12  ;;  %102 = vmax.xlane.f32.xlu0 %v95_v12  ;;  %v133_v27 = vsel %vm131_vm3, %v95_v12, 0.0 }
 0x156   :  { %v101_v14 = vpop.xlane.xlu0 %100 }
 0x157   :  { %v104_v15 = vsub.f32 %v92_v9, %v101_v14 }
 0x159   :  { %v106_v16 = vmul.f32 1.442695, %v104_v15 }
 0x15a   :  { %v103_v17 = vpop.xlane.xlu0 %102 }
 0x15b   :  { %219 = vpow2.f32 %v106_v16  ;;  %v105_v18 = vsub.f32 %v95_v12, %v103_v17 }
 0x15d   :  { %v108_v19 = vmul.f32 1.442695, %v105_v18 }
 0x15f   :  { %221 = vpow2.f32 %v108_v19 }
 0x168   :  { %v220_v23 = vpop.eup %219 }
 0x169   :  { %110 = vadd.xlane.f32.xlu0 %v220_v23 }
 0x16c   :  { %v222_v25 = vpop.eup %221 }
 0x16d   :  { %134 = vadd.xlane.f32.xlu0 %v132_v26  ;;  %112 = vadd.xlane.f32.xlu1 %v222_v25 }
 0x171   :  { %136 = vadd.xlane.f32.xlu0 %v133_v27 }
 0x1f2   :  { %v111_v28 = vpop.xlane.xlu0 %110 }
 0x1f3   :  { %223 = vlog2.f32 %v111_v28 }
 0x1f6   :  { %v113_v29 = vpop.xlane.xlu1 %112  ;;  %v135_v32 = vpop.xlane.xlu0 %134 }
 0x1f7   :  { %225 = vlog2.f32 %v113_v29 }
 0x1fa   :  { %v137_v40 = vpop.xlane.xlu0 %136 }
 0x200   :  { %v224_v30 = vpop.eup %223 }
 0x201   :  { %v115_v31 = vmul.f32 0.6931472, %v224_v30 }
 0x203   :  { %v118_v33 = vadd.f32 %v115_v31, %v101_v14 }
 0x204   :  { %v226_v34 = vpop.eup %225 }
 0x205   :  { %v117_v35 = vmul.f32 0.6931472, %v226_v34  ;;  %v140_v36 = vsub.f32 %v118_v33, %v135_v32 }
 0x207   :  { %v119_v38 = vadd.f32 %v117_v35, %v103_v17  ;;  %v142_v41 = vmul.f32 %v140_v36, %v138_v37 }
 0x209   :  { %v141_v42 = vsub.f32 %v119_v38, %v137_v40  ;;  %v145_v44 = vsel %vm144_vm4, %v142_v41, 0.0 }
 0x20b   :  { %v143_v43 = vmul.f32 %v141_v42, %v139_v39 }
 0x20d   :  { %v146_v45 = vsel %vm144_vm4, %v143_v43, 0.0 }
 0x20e   :  { %v147_v48 = vadd.f32 %v146_v45, %v145_v44 }
 0x210   :  { %148 = vadd.xlane.f32.xlu0 %v147_v48 }
 0x214   :  { %160 = vadd.xlane.f32.xlu0 %v159_v49 }
 0x299   :  { %v149_v50 = vpop.xlane.xlu0 %148 }
 0x29a   :  { %v150_v51 = vrot.slane %v149_v50, 4 }
 0x29c   :  { %v151_v52 = vadd.f32 %v150_v51, %v149_v50 }
 0x29d   :  { %v161_v53 = vpop.xlane.xlu0 %160 }
 0x29e   :  { %v152_v54 = vrot.slane %v151_v52, 2  ;;  %v162_v55 = vrot.slane %v161_v53, 4 }
 0x2a0   :  { %v163_v56 = vadd.f32 %v162_v55, %v161_v53  ;;  %v153_v57 = vadd.f32 %v152_v54, %v151_v52 }
 0x2a2   :  { %v164_v58 = vrot.slane %v163_v56, 2  ;;  %v154_v59 = vrot.slane %v153_v57, 1 }
 0x2a4   :  { %v165_v60 = vadd.f32 %v164_v58, %v163_v56  ;;  %v155_v61 = vadd.f32 %v154_v59, %v153_v57 }
 0x2a6   :  { %207 = vpush %v155_v61  ;;  %v166_v62 = vrot.slane %v165_v60, 1 }
 0x2a8   :  { %v167_v63 = vadd.f32 %v166_v62, %v165_v60 }
 0x2aa   :  { %209 = vpush %v167_v63 }
 0x2d7   :  { %s208_s4 = spop %207 }
 0x2d8   :  { %v173_v2 = vstv %s208_s4 }
 0x2db   :  { %s210_s14 = spop %209 }
 0x2dc   :  { %v171_v0 = vstv %s210_s14 }
 0x2dd   :  { %v172_v3 = vsel %vm170_vm5, %v171_v0, 0.0 }
 0x2de   :  { %v174_v4 = vsel %vm169_vm6, %v173_v2, %v172_v3 }
 0x2df   :  { %v181_v5 = vadd.f32 %v180_v1, %v174_v4 }
 0x2e1   :  { %182 = vst [vmem:[%s320_s6] sm:$0x1] %v181_v5 }

</bundles_post_ra>
